<compile_context>
chip_gen: v7x
topology: tpu7x:2x2x1
jax: 0.10.0
libtpu: 0.0.40
codegen_flags: <defaults>
</compile_context>

<pallas_src>
import jax
import jax.numpy as jnp
from jax.experimental import pallas as pl
from jax.experimental.pallas import tpu as pltpu

DIM_H = 32          # config.dim_h
RULE_DIM = 16       # config.rule_dim
NUM_HGLAYERS = 2    # config.num_hglayers
N_NODES = 8         # hypergraph nodes per state
PARALLEL_OUTPUT = True

B = 64              # states evaluated per pallas_call
PACK = 4            # states packed side-by-side in one 128-lane row
PACKW = PACK * DIM_H            # 128 packed lanes
TB = 32             # states per grid step  -> grid = (2,)
GROUPS = TB // PACK             # 8 state-groups per step
ROWS = GROUPS * N_NODES         # 64 packed node rows per step (sublane dense)

# ---- resident parameter slab layout (row offsets all multiples of 8) --------
# Every weight region is a full [*, 128] lane tile (block-diagonal x4 copies).
_WHG_R = 0          # [128, 128] block-diag hypergraph-layer weight
_BHG_R = 128        # [  1, 128] tiled bias
_W1A_R = 136        # [128, 128] block-diag w1[:, :32]
_W1B_R = 264        # [128, 128] block-diag w1[:, 32:]
_B1A_R = 392        # [  1, 128]
_B1B_R = 400        # [  1, 128]
_W2A_R = 408        # [128, 128] block-diag w2[:32, :]
_W2B_R = 536        # [128, 128] block-diag w2[32:, :]
_B2_R = 664         # [  1, 128]
_W3_R = 672         # [128, 128] block-diag w3 (cols 0..63 used, rest zero)
_B3_R = 800         # [  1, 128] tiled b3 in lanes 0..63, rest zero
_POOL_R = 808       # [  8,  64] per-step global_mean_pool matrix
_SEG_R = 816        # [128, 128] 16-lane segment-sum matrix for softmax denom
SLAB_ROWS, SLAB_COLS = 944, 128   # ~472 KiB f32, DMA'd once, VMEM-resident

_FLOPS = (2 * NUM_HGLAYERS * B * N_NODES * DIM_H * DIM_H   # HG matmuls
          + 2 * B * N_NODES * DIM_H                         # mean pool
          + 2 * 2 * B * DIM_H * (2 * DIM_H)                 # MLP layers 1 + 2
          + 2 * B * DIM_H * RULE_DIM)                       # MLP layer 3
_TRANSC = (NUM_HGLAYERS * B * N_NODES * DIM_H               # HG GELU tanh
           + B * (2 * DIM_H + DIM_H)                        # MLP GELU tanh
           + B * RULE_DIM)                                  # softmax exp
_BYTES = 4 * ((B // PACK) * N_NODES * PACKW                 # packed inputs
              + SLAB_ROWS * SLAB_COLS                       # parameter slab
              + (B // PACK) * PACKW)                        # packed outputs


def _gelu(x):
    # TODO(synk): torch nn.GELU defaults to the exact erf form; the tanh
    # approximation is used here to guarantee Mosaic lowering (|diff| ~ 1e-3).
    c = 0.7978845608028654  # sqrt(2/pi)
    return 0.5 * x * (1.0 + jnp.tanh(c * (x + 0.044715 * x * x * x)))


def rule_actor_kernel(x_ref, p_ref, out_ref):
    # Static, full-lane-tile views of the resident parameter slab.
    whg = p_ref[_WHG_R:_WHG_R + PACKW, :]
    bhg = p_ref[_BHG_R:_BHG_R + 1, :]
    w1a = p_ref[_W1A_R:_W1A_R + PACKW, :]
    w1b = p_ref[_W1B_R:_W1B_R + PACKW, :]
    b1a = p_ref[_B1A_R:_B1A_R + 1, :]
    b1b = p_ref[_B1B_R:_B1B_R + 1, :]
    w2a = p_ref[_W2A_R:_W2A_R + PACKW, :]
    w2b = p_ref[_W2B_R:_W2B_R + PACKW, :]
    b2 = p_ref[_B2_R:_B2_R + 1, :]
    w3 = p_ref[_W3_R:_W3_R + PACKW, :]
    b3 = p_ref[_B3_R:_B3_R + 1, :]
    seg = p_ref[_SEG_R:_SEG_R + PACKW, :]
    # Pool matrix contracts over the 64 node rows of this step (only 64 of 128
    # lanes of its slab region hold data; tiny read, once per step).
    pool = p_ref[_POOL_R:_POOL_R + GROUPS, 0:ROWS]          # [8, 64]

    x = x_ref[...]                                           # [ROWS, 128] packed

    # HyperGraphModel: repeatedly apply the shared hypergraph layer.
    # TODO(synk): HyperGraphFeaturizer / HyperGraphLayer are not defined in the
    # provided source; a shared linear + GELU node update is the deterministic
    # stand-in for the node-update hot path (no hyperedge aggregation).
    bhg_b = jnp.broadcast_to(bhg, (ROWS, PACKW))             # hoisted broadcast
    acc = jnp.zeros((ROWS, PACKW), jnp.float32)
    for _ in range(NUM_HGLAYERS):
        x = _gelu(jnp.dot(x, whg, preferred_element_type=jnp.float32) + bhg_b)
        acc = acc + x                                        # sum of layer outputs
    pooled_src = acc if PARALLEL_OUTPUT else x

    # global_mean_pool over each state's N_NODES rows (precomputed matrix).
    rep = jnp.dot(pool, pooled_src, preferred_element_type=jnp.float32)  # [8,128]

    # RuleActor MLP head (Dropout == identity in eval mode), lane-packed:
    # hidden dim 64 per state is split into two 32-wide halves so everything
    # stays a 128-lane operand.
    h1a = _gelu(jnp.dot(rep, w1a, preferred_element_type=jnp.float32) + b1a)
    h1b = _gelu(jnp.dot(rep, w1b, preferred_element_type=jnp.float32) + b1b)
    h2 = _gelu(jnp.dot(h1a, w2a, preferred_element_type=jnp.float32)
               + jnp.dot(h1b, w2b, preferred_element_type=jnp.float32) + b2)
    logits = jnp.dot(h2, w3, preferred_element_type=jnp.float32) + b3   # [8,128]

    # Segmented softmax over each state's 16 lanes.  A single per-row max is
    # used as the stability constant (it cancels per segment, so this is exact;
    # pad lanes 64..127 hold zero logits and are discarded host-side).
    m = jnp.max(logits, axis=-1, keepdims=True)
    e = jnp.exp(logits - m)
    denom = jnp.dot(e, seg, preferred_element_type=jnp.float32)  # per-segment sums
    out_ref[...] = e / denom                                  # exact divide


def _block_diag4(w):
    """[k, n] -> [4k, 128] with 4 diagonal copies (lane-padded to 128)."""
    k, n = w.shape
    out = jnp.zeros((PACK * k, SLAB_COLS), jnp.float32)
    for p in range(PACK):
        out = out.at[p * k:(p + 1) * k, p * n:(p + 1) * n].set(w.astype(jnp.float32))
    return out


def _tile_bias(b):
    """[1, n] -> [1, 128] with 4 copies side by side (lane-padded to 128)."""
    n = b.shape[1]
    row = jnp.zeros((1, SLAB_COLS), jnp.float32)
    for p in range(PACK):
        row = row.at[0, p * n:(p + 1) * n].set(b[0].astype(jnp.float32))
    return row


def pack_params(whg, bhg, w1, b1, w2, b2, w3, b3):
    """Coalesce all weights/biases (+pool & segment matrices) into one slab."""
    slab = jnp.zeros((SLAB_ROWS, SLAB_COLS), jnp.float32)

    def put(s, r, a):
        return s.at[r:r + a.shape[0], 0:a.shape[1]].set(a)

    slab = put(slab, _WHG_R, _block_diag4(whg))
    slab = put(slab, _BHG_R, _tile_bias(bhg))
    slab = put(slab, _W1A_R, _block_diag4(w1[:, :DIM_H]))
    slab = put(slab, _W1B_R, _block_diag4(w1[:, DIM_H:]))
    slab = put(slab, _B1A_R, _tile_bias(b1[:, :DIM_H]))
    slab = put(slab, _B1B_R, _tile_bias(b1[:, DIM_H:]))
    slab = put(slab, _W2A_R, _block_diag4(w2[:DIM_H, :]))
    slab = put(slab, _W2B_R, _block_diag4(w2[DIM_H:, :]))
    slab = put(slab, _B2_R, _tile_bias(b2))
    slab = put(slab, _W3_R, _block_diag4(w3))
    slab = put(slab, _B3_R, _tile_bias(b3))

    # global_mean_pool matrix: pool[g, r] = 1/N_NODES iff row r belongs to group g.
    pool = jnp.zeros((GROUPS, SLAB_COLS), jnp.float32)
    for g in range(GROUPS):
        pool = pool.at[g, g * N_NODES:(g + 1) * N_NODES].set(1.0 / N_NODES)
    slab = put(slab, _POOL_R, pool)

    # softmax segment-sum matrix: seg[i, j] = 1 iff lanes i, j share a 16-lane segment.
    lane = jnp.arange(SLAB_COLS)
    seg = (lane[:, None] // RULE_DIM == lane[None, :] // RULE_DIM).astype(jnp.float32)
    slab = put(slab, _SEG_R, seg)
    return slab


def pack_states(x_batch):
    """[B, N_NODES, DIM_H] -> [B//PACK * N_NODES, PACK*DIM_H] lane-packed rows."""
    xb = x_batch.reshape(B // PACK, PACK, N_NODES, DIM_H)
    xb = jnp.transpose(xb, (0, 2, 1, 3))          # (group, node, pack, feature)
    return xb.reshape(B // PACK * N_NODES, PACKW).astype(jnp.float32)


def rule_actor_forward(x_packed, param_slab):
    """x_packed: [B//PACK*N_NODES, 128]; param_slab: [944, 128]. -> [B, RULE_DIM]."""
    out_packed = pl.pallas_call(
        rule_actor_kernel,
        out_shape=jax.ShapeDtypeStruct((B // PACK, PACKW), jnp.float32),
        grid_spec=pltpu.PrefetchScalarGridSpec(
            num_scalar_prefetch=0,
            grid=(B // TB,),                                  # 2 steps
            in_specs=[
                # per-step tile: 8 state-groups x 8 nodes, 128 packed lanes
                pl.BlockSpec((ROWS, PACKW), lambda b: (b, 0)),
                # whole parameter slab: single-buffered, VMEM-resident
                pl.BlockSpec(memory_space=pltpu.MemorySpace.VMEM),
            ],
            # lane-dense output: one full 128-lane row per state-group
            out_specs=pl.BlockSpec((GROUPS, PACKW), lambda b: (b, 0)),
        ),
        compiler_params=pltpu.CompilerParams(
            dimension_semantics=("parallel",)),   # v7x: one step per TensorCore
        cost_estimate=pl.CostEstimate(
            flops=_FLOPS, transcendentals=_TRANSC, bytes_accessed=_BYTES),
    )(x_packed, param_slab)
    # Unpack: lanes [p*16, (p+1)*16) of group-row g hold state (4g+p)'s probs.
    return out_packed[:, :PACK * RULE_DIM].reshape(B, RULE_DIM)


def rule_actor_reference(x_batch, params):
    """Pure-JAX reference with identical math, for correctness checking."""
    whg, bhg, w1, b1, w2, b2, w3, b3 = params

    def single(x):
        acc = jnp.zeros_like(x)
        for _ in range(NUM_HGLAYERS):
            x = _gelu(x @ whg + bhg)
            acc = acc + x
        rep = jnp.mean(acc if PARALLEL_OUTPUT else x, axis=0, keepdims=True)
        h = _gelu(rep @ w1 + b1)
        h = _gelu(h @ w2 + b2)
        logits = h @ w3 + b3
        return jax.nn.softmax(logits, axis=-1)[0]

    return jax.vmap(single)(x_batch)


if __name__ == "__main__":
    key = jax.random.PRNGKey(0)
    ks = jax.random.split(key, 9)

    def init(k, shape, scale):
        return jax.random.normal(k, shape, jnp.float32) * scale

    # Deterministic synthetic batch of "featurized" hypergraph states.
    x_batch = jax.random.normal(ks[0], (B, N_NODES, DIM_H), jnp.float32)

    # Deterministic synthetic parameters (shapes follow the module __init__).
    whg = init(ks[1], (DIM_H, DIM_H), 0.1)           # surrogate hypergraph layer
    bhg = init(ks[2], (1, DIM_H), 0.01)
    w1 = init(ks[3], (DIM_H, 2 * DIM_H), 0.1)        # Linear(dim_h, 2*dim_h)
    b1 = init(ks[4], (1, 2 * DIM_H), 0.01)
    w2 = init(ks[5], (2 * DIM_H, DIM_H), 0.1)        # Linear(2*dim_h, dim_h)
    b2 = init(ks[6], (1, DIM_H), 0.01)
    w3 = init(ks[7], (DIM_H, RULE_DIM), 0.1)         # Linear(dim_h, rule_dim)
    b3 = init(ks[8], (1, RULE_DIM), 0.01)
    params = (whg, bhg, w1, b1, w2, b2, w3, b3)

    slab = pack_params(*params)
    x_packed = pack_states(x_batch)

    out = rule_actor_forward(x_packed, slab)
    jax.block_until_ready(out)

    ref = rule_actor_reference(x_batch, params)
    assert out.shape == (B, RULE_DIM)
    assert jnp.allclose(out, ref, atol=1e-5, rtol=1e-5), "mismatch vs reference"
    assert jnp.allclose(jnp.sum(out, axis=-1), jnp.ones((B,)), atol=1e-4), \
        "softmax rows do not sum to 1"

    print("KERNEL_OK")
</pallas_src>

<mosaic_0001>
module attributes {stable_mosaic.version = 11 : i64} {
  func.func @rule_actor_kernel(%arg0: i32, %arg1: memref<64x128xf32, #tpu.memory_space<vmem>>, %arg2: memref<944x128xf32, #tpu.memory_space<vmem>>, %arg3: memref<8x128xf32, #tpu.memory_space<vmem>>) attributes {dimension_semantics = [#tpu.dimension_semantics<parallel>], iteration_bounds = array<i64: 2>, scalar_prefetch = 0 : i64, scratch_operands = 0 : i64, tpu.core_type = #tpu.core_type<tc>, window_params = [{transform_indices = @transform_0, window_bounds = array<i64: 64, 128>}, {pipeline_mode = #tpu.pipeline_mode<synchronous>, transform_indices = @transform_1, window_bounds = array<i64: 944, 128>}, {transform_indices = @transform_2, window_bounds = array<i64: 8, 128>}]} {
    %c0 = arith.constant 0 : index
    %c0_0 = arith.constant 0 : index
    %0 = vector.load %arg2[%c0, %c0_0] : memref<944x128xf32, #tpu.memory_space<vmem>>, vector<128x128xf32>
    %c128 = arith.constant 128 : index
    %c0_1 = arith.constant 0 : index
    %1 = vector.load %arg2[%c128, %c0_1] : memref<944x128xf32, #tpu.memory_space<vmem>>, vector<1x128xf32>
    %c136 = arith.constant 136 : index
    %c0_2 = arith.constant 0 : index
    %2 = vector.load %arg2[%c136, %c0_2] : memref<944x128xf32, #tpu.memory_space<vmem>>, vector<128x128xf32>
    %c264 = arith.constant 264 : index
    %c0_3 = arith.constant 0 : index
    %3 = vector.load %arg2[%c264, %c0_3] : memref<944x128xf32, #tpu.memory_space<vmem>>, vector<128x128xf32>
    %c392 = arith.constant 392 : index
    %c0_4 = arith.constant 0 : index
    %4 = vector.load %arg2[%c392, %c0_4] : memref<944x128xf32, #tpu.memory_space<vmem>>, vector<1x128xf32>
    %c400 = arith.constant 400 : index
    %c0_5 = arith.constant 0 : index
    %5 = vector.load %arg2[%c400, %c0_5] : memref<944x128xf32, #tpu.memory_space<vmem>>, vector<1x128xf32>
    %c408 = arith.constant 408 : index
    %c0_6 = arith.constant 0 : index
    %6 = vector.load %arg2[%c408, %c0_6] : memref<944x128xf32, #tpu.memory_space<vmem>>, vector<128x128xf32>
    %c536 = arith.constant 536 : index
    %c0_7 = arith.constant 0 : index
    %7 = vector.load %arg2[%c536, %c0_7] : memref<944x128xf32, #tpu.memory_space<vmem>>, vector<128x128xf32>
    %c664 = arith.constant 664 : index
    %c0_8 = arith.constant 0 : index
    %8 = vector.load %arg2[%c664, %c0_8] : memref<944x128xf32, #tpu.memory_space<vmem>>, vector<1x128xf32>
    %c672 = arith.constant 672 : index
    %c0_9 = arith.constant 0 : index
    %9 = vector.load %arg2[%c672, %c0_9] : memref<944x128xf32, #tpu.memory_space<vmem>>, vector<128x128xf32>
    %c800 = arith.constant 800 : index
    %c0_10 = arith.constant 0 : index
    %10 = vector.load %arg2[%c800, %c0_10] : memref<944x128xf32, #tpu.memory_space<vmem>>, vector<1x128xf32>
    %c816 = arith.constant 816 : index
    %c0_11 = arith.constant 0 : index
    %11 = vector.load %arg2[%c816, %c0_11] : memref<944x128xf32, #tpu.memory_space<vmem>>, vector<128x128xf32>
    %c808 = arith.constant 808 : index
    %c0_12 = arith.constant 0 : index
    %12 = vector.load %arg2[%c808, %c0_12] : memref<944x128xf32, #tpu.memory_space<vmem>>, vector<8x64xf32>
    %c0_13 = arith.constant 0 : index
    %c0_14 = arith.constant 0 : index
    %13 = vector.load %arg1[%c0_13, %c0_14] : memref<64x128xf32, #tpu.memory_space<vmem>>, vector<64x128xf32>
    %14 = vector.shape_cast %1 : vector<1x128xf32> to vector<1x128xf32>
    %15 = vector.broadcast %14 : vector<1x128xf32> to vector<64x128xf32>
    %cst = arith.constant 0.000000e+00 : f32
    %16 = vector.broadcast %cst : f32 to vector<64x128xf32>
    %cst_15 = arith.constant dense<0.000000e+00> : vector<64x128xf32>
    %17 = tpu.matmul %13, %0, %cst_15 {dimension_numbers = #tpu.dot_dimension_numbers<[1], [0], [0], [1], [0, 0, 1, 1], [], []>} : vector<64x128xf32>, vector<128x128xf32>, vector<64x128xf32> -> vector<64x128xf32>
    %18 = arith.addf %17, %15 : vector<64x128xf32>
    %cst_16 = arith.constant 5.000000e-01 : f32
    %19 = vector.broadcast %cst_16 : f32 to vector<64x128xf32>
    %20 = arith.mulf %19, %18 : vector<64x128xf32>
    %cst_17 = arith.constant 4.471500e-02 : f32
    %21 = vector.broadcast %cst_17 : f32 to vector<64x128xf32>
    %22 = arith.mulf %21, %18 : vector<64x128xf32>
    %23 = arith.mulf %22, %18 : vector<64x128xf32>
    %24 = arith.mulf %23, %18 : vector<64x128xf32>
    %25 = arith.addf %18, %24 : vector<64x128xf32>
    %cst_18 = arith.constant 0.797884583 : f32
    %26 = vector.broadcast %cst_18 : f32 to vector<64x128xf32>
    %27 = arith.mulf %26, %25 : vector<64x128xf32>
    %28 = math.tanh %27 : vector<64x128xf32>
    %cst_19 = arith.constant 1.000000e+00 : f32
    %29 = vector.broadcast %cst_19 : f32 to vector<64x128xf32>
    %30 = arith.addf %29, %28 : vector<64x128xf32>
    %31 = arith.mulf %20, %30 : vector<64x128xf32>
    %32 = arith.addf %16, %31 : vector<64x128xf32>
    %cst_20 = arith.constant dense<0.000000e+00> : vector<64x128xf32>
    %33 = tpu.matmul %31, %0, %cst_20 {dimension_numbers = #tpu.dot_dimension_numbers<[1], [0], [0], [1], [0, 0, 1, 1], [], []>} : vector<64x128xf32>, vector<128x128xf32>, vector<64x128xf32> -> vector<64x128xf32>
    %34 = arith.addf %33, %15 : vector<64x128xf32>
    %cst_21 = arith.constant 5.000000e-01 : f32
    %35 = vector.broadcast %cst_21 : f32 to vector<64x128xf32>
    %36 = arith.mulf %35, %34 : vector<64x128xf32>
    %cst_22 = arith.constant 4.471500e-02 : f32
    %37 = vector.broadcast %cst_22 : f32 to vector<64x128xf32>
    %38 = arith.mulf %37, %34 : vector<64x128xf32>
    %39 = arith.mulf %38, %34 : vector<64x128xf32>
    %40 = arith.mulf %39, %34 : vector<64x128xf32>
    %41 = arith.addf %34, %40 : vector<64x128xf32>
    %cst_23 = arith.constant 0.797884583 : f32
    %42 = vector.broadcast %cst_23 : f32 to vector<64x128xf32>
    %43 = arith.mulf %42, %41 : vector<64x128xf32>
    %44 = math.tanh %43 : vector<64x128xf32>
    %cst_24 = arith.constant 1.000000e+00 : f32
    %45 = vector.broadcast %cst_24 : f32 to vector<64x128xf32>
    %46 = arith.addf %45, %44 : vector<64x128xf32>
    %47 = arith.mulf %36, %46 : vector<64x128xf32>
    %48 = arith.addf %32, %47 : vector<64x128xf32>
    %cst_25 = arith.constant dense<0.000000e+00> : vector<8x128xf32>
    %49 = tpu.matmul %12, %48, %cst_25 {dimension_numbers = #tpu.dot_dimension_numbers<[1], [0], [0], [1], [0, 0, 1, 1], [], []>} : vector<8x64xf32>, vector<64x128xf32>, vector<8x128xf32> -> vector<8x128xf32>
    %cst_26 = arith.constant dense<0.000000e+00> : vector<8x128xf32>
    %50 = tpu.matmul %49, %2, %cst_26 {dimension_numbers = #tpu.dot_dimension_numbers<[1], [0], [0], [1], [0, 0, 1, 1], [], []>} : vector<8x128xf32>, vector<128x128xf32>, vector<8x128xf32> -> vector<8x128xf32>
    %51 = vector.broadcast %4 : vector<1x128xf32> to vector<8x128xf32>
    %52 = arith.addf %50, %51 : vector<8x128xf32>
    %cst_27 = arith.constant 5.000000e-01 : f32
    %53 = vector.broadcast %cst_27 : f32 to vector<8x128xf32>
    %54 = arith.mulf %53, %52 : vector<8x128xf32>
    %cst_28 = arith.constant 4.471500e-02 : f32
    %55 = vector.broadcast %cst_28 : f32 to vector<8x128xf32>
    %56 = arith.mulf %55, %52 : vector<8x128xf32>
    %57 = arith.mulf %56, %52 : vector<8x128xf32>
    %58 = arith.mulf %57, %52 : vector<8x128xf32>
    %59 = arith.addf %52, %58 : vector<8x128xf32>
    %cst_29 = arith.constant 0.797884583 : f32
    %60 = vector.broadcast %cst_29 : f32 to vector<8x128xf32>
    %61 = arith.mulf %60, %59 : vector<8x128xf32>
    %62 = math.tanh %61 : vector<8x128xf32>
    %cst_30 = arith.constant 1.000000e+00 : f32
    %63 = vector.broadcast %cst_30 : f32 to vector<8x128xf32>
    %64 = arith.addf %63, %62 : vector<8x128xf32>
    %65 = arith.mulf %54, %64 : vector<8x128xf32>
    %cst_31 = arith.constant dense<0.000000e+00> : vector<8x128xf32>
    %66 = tpu.matmul %49, %3, %cst_31 {dimension_numbers = #tpu.dot_dimension_numbers<[1], [0], [0], [1], [0, 0, 1, 1], [], []>} : vector<8x128xf32>, vector<128x128xf32>, vector<8x128xf32> -> vector<8x128xf32>
    %67 = vector.broadcast %5 : vector<1x128xf32> to vector<8x128xf32>
    %68 = arith.addf %66, %67 : vector<8x128xf32>
    %cst_32 = arith.constant 5.000000e-01 : f32
    %69 = vector.broadcast %cst_32 : f32 to vector<8x128xf32>
    %70 = arith.mulf %69, %68 : vector<8x128xf32>
    %cst_33 = arith.constant 4.471500e-02 : f32
    %71 = vector.broadcast %cst_33 : f32 to vector<8x128xf32>
    %72 = arith.mulf %71, %68 : vector<8x128xf32>
    %73 = arith.mulf %72, %68 : vector<8x128xf32>
    %74 = arith.mulf %73, %68 : vector<8x128xf32>
    %75 = arith.addf %68, %74 : vector<8x128xf32>
    %cst_34 = arith.constant 0.797884583 : f32
    %76 = vector.broadcast %cst_34 : f32 to vector<8x128xf32>
    %77 = arith.mulf %76, %75 : vector<8x128xf32>
    %78 = math.tanh %77 : vector<8x128xf32>
    %cst_35 = arith.constant 1.000000e+00 : f32
    %79 = vector.broadcast %cst_35 : f32 to vector<8x128xf32>
    %80 = arith.addf %79, %78 : vector<8x128xf32>
    %81 = arith.mulf %70, %80 : vector<8x128xf32>
    %cst_36 = arith.constant dense<0.000000e+00> : vector<8x128xf32>
    %82 = tpu.matmul %65, %6, %cst_36 {dimension_numbers = #tpu.dot_dimension_numbers<[1], [0], [0], [1], [0, 0, 1, 1], [], []>} : vector<8x128xf32>, vector<128x128xf32>, vector<8x128xf32> -> vector<8x128xf32>
    %cst_37 = arith.constant dense<0.000000e+00> : vector<8x128xf32>
    %83 = tpu.matmul %81, %7, %cst_37 {dimension_numbers = #tpu.dot_dimension_numbers<[1], [0], [0], [1], [0, 0, 1, 1], [], []>} : vector<8x128xf32>, vector<128x128xf32>, vector<8x128xf32> -> vector<8x128xf32>
    %84 = arith.addf %82, %83 : vector<8x128xf32>
    %85 = vector.broadcast %8 : vector<1x128xf32> to vector<8x128xf32>
    %86 = arith.addf %84, %85 : vector<8x128xf32>
    %cst_38 = arith.constant 5.000000e-01 : f32
    %87 = vector.broadcast %cst_38 : f32 to vector<8x128xf32>
    %88 = arith.mulf %87, %86 : vector<8x128xf32>
    %cst_39 = arith.constant 4.471500e-02 : f32
    %89 = vector.broadcast %cst_39 : f32 to vector<8x128xf32>
    %90 = arith.mulf %89, %86 : vector<8x128xf32>
    %91 = arith.mulf %90, %86 : vector<8x128xf32>
    %92 = arith.mulf %91, %86 : vector<8x128xf32>
    %93 = arith.addf %86, %92 : vector<8x128xf32>
    %cst_40 = arith.constant 0.797884583 : f32
    %94 = vector.broadcast %cst_40 : f32 to vector<8x128xf32>
    %95 = arith.mulf %94, %93 : vector<8x128xf32>
    %96 = math.tanh %95 : vector<8x128xf32>
    %cst_41 = arith.constant 1.000000e+00 : f32
    %97 = vector.broadcast %cst_41 : f32 to vector<8x128xf32>
    %98 = arith.addf %97, %96 : vector<8x128xf32>
    %99 = arith.mulf %88, %98 : vector<8x128xf32>
    %cst_42 = arith.constant dense<0.000000e+00> : vector<8x128xf32>
    %100 = tpu.matmul %99, %9, %cst_42 {dimension_numbers = #tpu.dot_dimension_numbers<[1], [0], [0], [1], [0, 0, 1, 1], [], []>} : vector<8x128xf32>, vector<128x128xf32>, vector<8x128xf32> -> vector<8x128xf32>
    %101 = vector.broadcast %10 : vector<1x128xf32> to vector<8x128xf32>
    %102 = arith.addf %100, %101 : vector<8x128xf32>
    %cst_43 = arith.constant dense<0xFF800000> : vector<8xf32>
    %103 = vector.multi_reduction <maximumf>, %102, %cst_43 [1] : vector<8x128xf32> to vector<8xf32>
    %104 = vector.shape_cast %103 : vector<8xf32> to vector<8x1xf32>
    %105 = vector.broadcast %104 : vector<8x1xf32> to vector<8x128xf32>
    %106 = arith.subf %102, %105 : vector<8x128xf32>
    %107 = math.exp %106 : vector<8x128xf32>
    %cst_44 = arith.constant dense<0.000000e+00> : vector<8x128xf32>
    %108 = tpu.matmul %107, %11, %cst_44 {dimension_numbers = #tpu.dot_dimension_numbers<[1], [0], [0], [1], [0, 0, 1, 1], [], []>} : vector<8x128xf32>, vector<128x128xf32>, vector<8x128xf32> -> vector<8x128xf32>
    %109 = arith.divf %107, %108 : vector<8x128xf32>
    %c0_45 = arith.constant 0 : index
    %c0_46 = arith.constant 0 : index
    %110 = vector.load %arg3[%c0_45, %c0_46] : memref<8x128xf32, #tpu.memory_space<vmem>>, vector<8x128xf32>
    tpu.vector_store %arg3[%c0_45, %c0_46], %109 {strides = array<i32>} : memref<8x128xf32, #tpu.memory_space<vmem>>, vector<8x128xf32>,
    return
  }
  func.func @transform_0(%arg0: i32) -> (i32, i32) {
    %c0_i32 = arith.constant 0 : i32
    %c0_i32_0 = arith.constant 0 : i32
    return %arg0, %c0_i32 : i32, i32
  }
  func.func @transform_1(%arg0: i32) -> (i32, i32) {
    %c0_i32 = arith.constant 0 : i32
    %c0_i32_0 = arith.constant 0 : i32
    %c0_i32_1 = arith.constant 0 : i32
    return %c0_i32, %c0_i32_0 : i32, i32
  }
  func.func @transform_2(%arg0: i32) -> (i32, i32) {
    %c0_i32 = arith.constant 0 : i32
    %c0_i32_0 = arith.constant 0 : i32
    return %arg0, %c0_i32 : i32, i32
  }
}

</mosaic_0001>

<bundles_post_ra>
// kernel: tpu_custom_call.1
= control target key start
LH: loop header
LB: loop body
LE: loop exit
PB: predicated region body
PF: predicated region fallthrough
CT: control target
= control target key end

     0   :  { %7 = vsyncpa [#allocation3], 0  ;;  %s2702_s0 = inlined_call_operand.hbm [shape: f32[128,128], index: 0, kind: input, shape index: {}]   ;;  %s2703_s1 = inlined_call_operand.hbm [shape: f32[944,128], index: 1, kind: input, shape index: {}]   ;;  %s2704_s2 = inlined_call_operand.hbm [shape: f32[16,128], index: 2, kind: output, shape index: {}]  }
   0x1   :  { %9 = vsyncpa [#allocation3 + $0x1], 0 }
   0x2   :  { %10 = vsyncpa [#allocation6], 0 }
   0x3   :  { %11 = vsyncpa [#allocation4], 0 }
   0x4   :  { %13 = vsyncpa [#allocation4 + $0x1], 0  ;;  %s2293_s9 = smov 0   ;;  %s2295_s10 = smov 0  }
   0x5   :  { %s2297_s11 = smov 0   ;;  %s2299_s12 = smov 0  }
   0x6 LB: > { %s2314_s13 = sadd.s32 4294967295, %s2268_s12   ;;  %s1318_s14 = sadd.s32 4294967294, %s2268_s12   ;;  %s2268_s12 = sphi %s2299_s12, %s2724_s12   ;;  %s2264_s11 = sphi %s2297_s11, %s2723_s11   ;;  %s2260_s10 = sphi %s2295_s10, %s2722_s10   ;;  %s2256_s9 = sphi %s2293_s9, %s2721_s9  }
   0x7   : > { %p39_p0 = scmp.ne.s32.totalorder %s2260_s10, %s2256_s9  ;;  %p2705_p1 = scmp.eq.s32.totalorder %s2314_s13, 0 }
   0x8   : > { %p90_p3 = scmp.eq.s32.totalorder %s1318_s14, 1  ;;  %p1319_p5 = scmp.ge.s32.totalorder %s2268_s12, 1 }
   0x9   : > { %p2323_p4 = por %p2705_p1, %p39_p0  ;;  %p97_p7 = scmp.lt.s32.totalorder %s2268_s12, 3 }
   0xa   : > { %p2328_p6 = por %p90_p3, %p39_p0  ;;  %s2270_s18 = smov [#allocation5]  }
   0xb   : > { %s2708_s15 = scalar_select %p2323_p4, 1, 0 }
   0xc   : > { %s2709_s16 = scalar_select %p2328_p6, 1, 0 }
   0xd   : > { %p2333_p8 = pnand %p1319_p5, %p97_p7  ;;  %s109_s19 = sshll.u32 %s2270_s18, 4  ;;  %s2337_s19 = int_to_ptr.vmem [resolvable:$true] %s109_s19 }
   0xe   : > { %s2349_s21 = sadd.s32 1, %s2268_s12   ;;  %s26_s22 = sadd.s32 1, %s2264_s11 }
   0xf   : > { %s2710_s17 = scalar_select %p2333_p8, 1, 0 }
  0x10   : > { %p2044_p9 = pneg %p2333_p8  ;;  %s23_s23 = ssub.s32 %s2268_s12, %s2349_s21 }
  0x11   : > { %s2140_s26 = scalar_lea.hbm %s2703_s1, 15104 }
  0x12   : > { %p2344_p11 = pnand %p2044_p9, %p2705_p1  ;;  %p2141_p12 = scmp.ne.s32.totalorder %s2703_s1, %s2140_s26 }
  0x13   : > { %p2147_p5 = scmp.lt.u32.totalorder %s2140_s26, %s2703_s1 }
  0x14   : > { %p2142_p13 = pneg %p2344_p11 }
  0x16   : > { %p2143_p0 = pnand %p2142_p13, %p2141_p12 }
  0x18   : > { %p2144_p3 = pneg %p2143_p0 }
  0x1a   : > { %p2149_p7 = pnand %p2147_p5, %p2144_p3 }
  0x1c   : > { %2152 = shalt.err (!%p2149_p7)
}
  0x1d   : > { %s2153_s3 = scalar_lea.vmem %s2337_s19, 15104  ;;  %p2161_p2 = scmp.lt.s32.totalorder %s2337_s19, %s2337_s19 }
  0x1e   : > { %p2154_p9 = scmp.ne.s32.totalorder %s2337_s19, %s2153_s3  ;;  %p2162_p6 = scmp.lt.s32.totalorder %s2153_s3, %s2153_s3 }
  0x20   : > { %p2156_p10 = pnand %p2154_p9, %p2142_p13  ;;  %p2163_p4 = por %p2162_p6, %p2161_p2 }
  0x22   : > { %p2157_p1 = pneg %p2156_p10 }
  0x24   : > { %p2164_p8 = pnand %p2163_p4, %p2157_p1 }
  0x26   : > { %2167 = shalt.err (!%p2164_p8)
}
  0x27   : > { %s2271_s4 = smov 128   ;;  %s2272_s5 = smov 8  }
  0x28   : > { %2047 = dma.hbm_to_vmem [thread:$0]  (!%p2344_p11), %s2703_s1, 15104, %s2337_s19, [#allocation6], %s2271_s4, %s2271_s4, %s2272_s5  }
  0x29   : > { %p24_p1 = scmp.eq.s32.totalorder %s23_s23, 0  ;;  %p33_p2 = scmp.ne.s32.totalorder %s2264_s11, %s2260_s10 }
  0x2a   : > { %p34_p4 = scmp.eq.s32.totalorder %s2268_s12, 0  ;;  %p2057_p6 = scmp.lt.s32.totalorder %s2268_s12, 2 }
  0x2b   : > { %s2383_s8 = scalar_select %p24_p1, %s2264_s11, %s26_s22  }
  0x2c   : > { %p35_p8 = por %p34_p4, %p33_p2  ;;  %p2712_p10 = scmp.eq.s32.totalorder %s2314_s13, 1 }
  0x2d   : > { %s123_s18 = sand.u32 1, %s2264_s11   ;;  %s1339_s20 = sshll.u32 %s2268_s12, 10 }
  0x2e   : > { %p2387_p12 = por %p2712_p10, %p33_p2  ;;  %s1322_s24 = sshll.u32 %s123_s18, 6 }
  0x2f   : > { %s2396_s27 = scalar_lea.hbm %s2702_s0, %s1339_s20  ;;  %s127_s19 = scalar_lea.vmem [#allocation2], %s1322_s24 }
  0x30   : > { %s134_s22 = sshll.u32 %s127_s19, 4  ;;  %p2398_p11 = pnand %p2057_p6, %p35_p8  ;;  %s2402_s22 = int_to_ptr.vmem [resolvable:$true] %s134_s22 }
  0x31   : > { %s2404_s28 = scalar_lea.sflag [#allocation3], %s123_s18  ;;  %s2168_s29 = scalar_lea.hbm %s2396_s27, 1024 }
  0x32   : > { %p2169_p13 = scmp.ne.s32.totalorder %s2396_s27, %s2168_s29  ;;  %p2170_p0 = pneg %p2398_p11 }
  0x33   : > { %s2173_s6 = scalar_lea.hbm %s2702_s0, 2048  ;;  %p2174_p7 = scmp.lt.u32.totalorder %s2396_s27, %s2702_s0 }
  0x34   : > { %p2171_p3 = pnand %p2170_p0, %p2169_p13  ;;  %p2175_p9 = scmp.lt.u32.totalorder %s2173_s6, %s2168_s29 }
  0x35   : > { %p2177_p2 = scmp.lt.u32.totalorder %s2168_s29, %s2396_s27 }
  0x36   : > { %p2172_p5 = pneg %p2171_p3  ;;  %p2176_p1 = por %p2175_p9, %p2174_p7 }
  0x38   : > { %p2178_p4 = por %p2177_p2, %p2176_p1 }
  0x3a   : > { %p2179_p6 = pnand %p2178_p4, %p2172_p5 }
  0x3c   : > { %2182 = shalt.err (!%p2179_p6)
}
  0x3d   : > { %s2183_s18 = scalar_lea.vmem %s2402_s22, 1024  ;;  %s2273_s24 = smov [#allocation2]  }
  0x3e   : > { %p2184_p8 = scmp.ne.s32.totalorder %s2402_s22, %s2183_s18  ;;  %s2188_s25 = sshll.u32 %s2273_s24, 4  ;;  %s2189_s25 = int_to_ptr.vmem [resolvable:$false] %s2188_s25 }
  0x3f   : > { %s2190_s26 = scalar_lea.vmem %s2189_s25, 2048  ;;  %p2191_p3 = scmp.lt.s32.totalorder %s2402_s22, %s2189_s25 }
  0x40   : > { %p2186_p10 = pnand %p2184_p8, %p2170_p0  ;;  %p2192_p7 = scmp.lt.s32.totalorder %s2190_s26, %s2183_s18 }
  0x42   : > { %p2187_p13 = pneg %p2186_p10  ;;  %p2193_p9 = por %p2192_p7, %p2191_p3 }
  0x44   : > { %p2194_p1 = pnand %p2193_p9, %p2187_p13 }
  0x46   : > { %2197 = shalt.err (!%p2194_p1)
}
  0x47   : > { %2051 = dma.hbm_to_vmem [thread:$0]  (!%p2398_p11), %s2396_s27, 1024, %s2402_s22, %s2404_s28, %s2271_s4, %s2271_s4, %s2272_s5  }
  0x48   : > { %p2715_p0 = scmp.ne.s32.totalorder %s2710_s17, 0 }
  0x49   : > { %s2438_s19 = sand.u32 (!%p2715_p0), 1, %s2260_s10   ;;  %p2716_p5 = scmp.ne.s32.totalorder (!%p2715_p0), %s2708_s15, 0 }
  0x4a   : > { %146 = sbr.rel (%p2715_p0) target bundleno = 1923 (0x783), region = 28  ;;  %s1326_s29 = sshll.u32 (!%p2715_p0), %s2438_s19, 6 }
  0x4b   : > { %s149_s30 = scalar_lea.sflag (!%p2715_p0), [#allocation3], %s2438_s19  ;;  %s2442_s3 = scalar_lea.vmem (!%p2715_p0), [#allocation2], %s1326_s29 }
  0x51   : > { %2243 = dma.done.wait (%p2716_p5), %s149_s30, 1024  }
  0x52   : > { %2245 = vsyncadd (%p2716_p5), %s149_s30, 4294966272  ;;  %p2717_p11 = scmp.eq.s32.totalorder %s2314_s13, 0 }
  0x54   : > { %2247 = dma.done.wait (%p2717_p11), [#allocation6], 15104   ;;  %p2718_p2 = pmov %p2717_p11 }
  0x55   : > { %v178_v0 = vld [vmem:[#allocation5] sm:$0xff]  ;;  %v179_v1 = vld [vmem:[#allocation5 + $0x8] sm:$0xff]  ;;  %v180_v2 = vld [vmem:[#allocation5 + $0x10] sm:$0xff]  ;;  %vm2275_vm0 = vmmov 0   ;;  %vm678_vm1 = vcmask 523264   ;;  %s1328_s15 = sshll.u32 %s2438_s19, 3 }
  0x56   : > { %2249 = vsyncadd (%p2718_p2), [#allocation6], 4294952192  ;;  %v1816_v3 = vpack.c.bf16 %v179_v1, %v178_v0  ;;  %v181_v4 = vld [vmem:[#allocation5 + $0x18] sm:$0xff]  ;;  %v182_v6 = vld [vmem:[#allocation5 + $0x20] sm:$0xff]  ;;  %s1336_s17 = sshll.u32 %s2314_s13, 7  ;;  %s176_s4 = scalar_lea.vmem [#allocation7], %s1328_s15 }
  0x57   : > { %v1820_v5 = vpack.c.bf16 %v181_v4, %v180_v2  ;;  %v183_v7 = vld [vmem:[#allocation5 + $0x28] sm:$0xff]  ;;  %v296_v9 = vld [vmem:[%s2442_s3] sm:$0xff]  ;;  %v184_v10 = vld [vmem:[#allocation5 + $0x30] sm:$0xff]  ;;  %s1238_s5 = sshll.u32 %s176_s4, 4  ;;  %s2658_s23 = scalar_lea.hbm %s2704_s2, %s1336_s17  ;;  %s2660_s5 = int_to_ptr.vmem [resolvable:$true] %s1238_s5 }
  0x58   : > { %1817 = vmatprep.subr.bf16.mxu0 %v1816_v3  ;;  %1849 = vmatprep.subr.bf16.mxu1 %v1816_v3  ;;  %v1824_v8 = vpack.c.bf16 %v183_v7, %v182_v6  ;;  %v185_v11 = vld [vmem:[#allocation5 + $0x38] sm:$0xff]  ;;  %v186_v13 = vld [vmem:[#allocation5 + $0x40] sm:$0xff]  ;;  %v187_v14 = vld [vmem:[#allocation5 + $0x48] sm:$0xff]  ;;  %s1225_s28 = scalar_lea.sflag [#allocation4], %s2438_s19  ;;  %s2198_s6 = scalar_lea.vmem %s2660_s5, 128 }
  0x59   : > { %1819 = vmatpush3.bf16.msra.mxu0 %v1816_v3  ;;  %1851 = vmatpush3.bf16.msra.mxu1 %v1816_v3  ;;  %v1828_v12 = vpack.c.bf16 %v185_v11, %v184_v10  ;;  %v1832_v15 = vpack.c.bf16 %v187_v14, %v186_v13  ;;  %v188_v16 = vld [vmem:[#allocation5 + $0x50] sm:$0xff]  ;;  %v189_v17 = vld [vmem:[#allocation5 + $0x58] sm:$0xff]  ;;  %v190_v19 = vld [vmem:[#allocation5 + $0x60] sm:$0xff]  ;;  %p2199_p4 = scmp.ne.s32.totalorder %s2660_s5, %s2198_s6  ;;  %s2277_s13 = smov [#allocation7]  }
  0x5a   : > { %1821 = vmatprep.subr.bf16.mxu0 %v1820_v5  ;;  %1853 = vmatprep.subr.bf16.mxu1 %v1820_v5  ;;  %v1836_v18 = vpack.c.bf16 %v189_v17, %v188_v16  ;;  %v191_v20 = vld [vmem:[#allocation5 + $0x68] sm:$0xff]  ;;  %v192_v22 = vld [vmem:[#allocation5 + $0x70] sm:$0xff]  ;;  %v193_v23 = vld [vmem:[#allocation5 + $0x78] sm:$0xff]  ;;  %s2202_s7 = sshll.u32 %s2277_s13, 4  ;;  %s2203_s7 = int_to_ptr.vmem [resolvable:$false] %s2202_s7 }
  0x5b   : > { %1531 = vmatprep.mubr.f32.mxu0 %v296_v9  ;;  %v1840_v21 = vpack.c.bf16 %v191_v20, %v190_v19  ;;  %v1844_v24 = vpack.c.bf16 %v193_v23, %v192_v22  ;;  %v297_v25 = vld [vmem:[%s2442_s3 + $0x8] sm:$0xff]  ;;  %v298_v26 = vld [vmem:[%s2442_s3 + $0x10] sm:$0xff]  ;;  %v299_v27 = vld [vmem:[%s2442_s3 + $0x18] sm:$0xff]  ;;  %p2200_p6 = pnand %p2199_p4, %p2387_p12  ;;  %s2204_s20 = scalar_lea.vmem %s2203_s7, 256 }
  0x5c   : > { %v300_v28 = vld [vmem:[%s2442_s3 + $0x20] sm:$0xff]  ;;  %v301_v29 = vld [vmem:[%s2442_s3 + $0x28] sm:$0xff]  ;;  %v302_v30 = vld [vmem:[%s2442_s3 + $0x30] sm:$0xff]  ;;  %p2205_p10 = scmp.lt.s32.totalorder %s2660_s5, %s2203_s7  ;;  %p2206_p13 = scmp.lt.s32.totalorder %s2204_s20, %s2198_s6 }
  0x5d   : > { %1823 = vmatpush3.bf16.msra.mxu0 %v1820_v5  ;;  %1855 = vmatpush3.bf16.msra.mxu1 %v1820_v5  ;;  %v303_v31 = vld [vmem:[%s2442_s3 + $0x38] sm:$0xff]  ;;  %v2460_v32 = vld [vmem:[#allocation5 + $0x80] ss:$0 sm:$0xff]  ;;  %p2201_p8 = pneg %p2200_p6 }
  0x5e   : > { %1825 = vmatprep.subr.bf16.mxu0 %v1824_v8  ;;  %1857 = vmatprep.subr.bf16.mxu1 %v1824_v8  ;;  %p2207_p3 = por %p2206_p13, %p2205_p10 }
  0x60   : > { %p2208_p7 = pnand %p2207_p3, %p2201_p8 }
  0x61   : > { %1827 = vmatpush3.bf16.msra.mxu0 %v1824_v8  ;;  %1859 = vmatpush3.bf16.msra.mxu1 %v1824_v8 }
  0x62   : > { %1829 = vmatprep.subr.bf16.mxu0 %v1828_v12  ;;  %1861 = vmatprep.subr.bf16.mxu1 %v1828_v12 }
  0x65   : > { %1831 = vmatpush3.bf16.msra.mxu0 %v1828_v12  ;;  %1863 = vmatpush3.bf16.msra.mxu1 %v1828_v12 }
  0x66   : > { %1833 = vmatprep.subr.bf16.mxu0 %v1832_v15  ;;  %1865 = vmatprep.subr.bf16.mxu1 %v1832_v15 }
  0x69   : > { %1835 = vmatpush3.bf16.msra.mxu0 %v1832_v15  ;;  %1867 = vmatpush3.bf16.msra.mxu1 %v1832_v15 }
  0x6a   : > { %1837 = vmatprep.subr.bf16.mxu0 %v1836_v18  ;;  %1869 = vmatprep.subr.bf16.mxu1 %v1836_v18 }
  0x6d   : > { %1839 = vmatpush3.bf16.msra.mxu0 %v1836_v18  ;;  %1871 = vmatpush3.bf16.msra.mxu1 %v1836_v18 }
  0x6e   : > { %1841 = vmatprep.subr.bf16.mxu0 %v1840_v21  ;;  %1873 = vmatprep.subr.bf16.mxu1 %v1840_v21 }
  0x71   : > { %1843 = vmatpush3.bf16.msra.mxu0 %v1840_v21  ;;  %1875 = vmatpush3.bf16.msra.mxu1 %v1840_v21 }
  0x72   : > { %1845 = vmatprep.subr.bf16.mxu0 %v1844_v24  ;;  %1877 = vmatprep.subr.bf16.mxu1 %v1844_v24 }
  0x75   : > { %1847 = vmatpush3.bf16.msra.mxu0 %v1844_v24  ;;  %1879 = vmatpush3.bf16.msra.mxu1 %v1844_v24 }
  0x78   : > { %1532 = vmatmul.mubr.f32.vlgmr.msra.gmra.mrb[0].mxu0 %v297_v25 }
  0x79   : > { %1534 = vmatprep.mubr.f32.mxu0 %v298_v26 }
  0x7c   : > { %1535 = vmatmul.mubr.f32.gmra.mrb[2].mxu0 %v299_v27 }
  0x7d   : > { %1537 = vmatprep.mubr.f32.mxu0 %v300_v28 }
  0x80   : > { %1538 = vmatmul.mubr.f32.gmra.mrb[4].mxu0 %v301_v29 }
  0x81   : > { %1540 = vmatprep.mubr.f32.mxu0 %v302_v30 }
  0x84   : > { %1541 = vmatmul.mubr.f32.gmra.mrb[6].mxu0 %v303_v31 }
 0x14b   : > { %v1533_v33 = vpop.f32.mrb[0].mxu0 }
 0x14c   : > { %v2463_v34 = vadd.f32 %v1533_v33, %v2460_v32  ;;  %v374_v35 = vpop.f32.mrb[1].mxu0 }
 0x14d   : > { %v375_v36 = vadd.f32 %v2460_v32, %v374_v35 }
 0x14e   : > { %v422_v37 = vmul.f32 0.044715, %v2463_v34  ;;  %v414_v30 = vmul.f32 0.5, %v2463_v34 }
 0x14f   : > { %v421_v38 = vmul.f32 0.044715, %v375_v36  ;;  %v1536_v39 = vpop.f32.mrb[2].mxu0  ;;  %v413_v28 = vmul.f32 0.5, %v375_v36 }
 0x150   : > { %v430_v40 = vmul.f32 %v422_v37, %v2463_v34  ;;  %v2469_v41 = vadd.f32 %v1536_v39, %v2460_v32  ;;  %v384_v42 = vpop.f32.mrb[3].mxu0 }
 0x151   : > { %v2472_v43 = vadd.f32 %v2460_v32, %v384_v42  ;;  %v429_v44 = vmul.f32 %v421_v38, %v375_v36 }
 0x152   : > { %v424_v45 = vmul.f32 0.044715, %v2469_v41  ;;  %v438_v46 = vmul.f32 %v430_v40, %v2463_v34 }
 0x153   : > { %v423_v47 = vmul.f32 0.044715, %v2472_v43  ;;  %v1539_v48 = vpop.f32.mrb[4].mxu0  ;;  %v437_v49 = vmul.f32 %v429_v44, %v375_v36  ;;  %v415_v39 = vmul.f32 0.5, %v2472_v43 }
 0x154   : > { %v432_v50 = vmul.f32 %v424_v45, %v2469_v41  ;;  %v2479_v51 = vadd.f32 %v1539_v48, %v2460_v32  ;;  %v394_v52 = vpop.f32.mrb[5].mxu0  ;;  %v446_v53 = vadd.f32 %v438_v46, %v2463_v34 }
 0x155   : > { %v431_v54 = vmul.f32 %v423_v47, %v2472_v43  ;;  %v2484_v55 = vadd.f32 %v2460_v32, %v394_v52  ;;  %v445_v56 = vadd.f32 %v437_v49, %v375_v36  ;;  %v416_v36 = vmul.f32 0.5, %v2469_v41 }
 0x156   : > { %v426_v57 = vmul.f32 0.044715, %v2479_v51  ;;  %v454_v58 = vmul.f32 0.7978846, %v446_v53  ;;  %v440_v59 = vmul.f32 %v432_v50, %v2469_v41 }
 0x157   : > { %v425_v60 = vmul.f32 0.044715, %v2484_v55  ;;  %v1542_v61 = vpop.f32.mrb[6].mxu0  ;;  %v453_v62 = vmul.f32 0.7978846, %v445_v56  ;;  %v439_v63 = vmul.f32 %v431_v54, %v2472_v43  ;;  %v417_v47 = vmul.f32 0.5, %v2484_v55 }
 0x158   : > { %v434_v0 = vmul.f32 %v426_v57, %v2479_v51  ;;  %v2492_v1 = vadd.f32 %v1542_v61, %v2460_v32  ;;  %v404_v2 = vpop.f32.mrb[7].mxu0  ;;  %2098 = vtanh.f32 %v454_v58  ;;  %v448_v3 = vadd.f32 %v440_v59, %v2469_v41  ;;  %v196_v61 = vld [vmem:[#allocation5 + $0x90] sm:$0xff] }
 0x159   : > { %v433_v4 = vmul.f32 %v425_v60, %v2484_v55  ;;  %v405_v5 = vadd.f32 %v2460_v32, %v404_v2  ;;  %2100 = vtanh.f32 %v453_v62  ;;  %v447_v6 = vadd.f32 %v439_v63, %v2472_v43  ;;  %v195_v60 = vld [vmem:[#allocation5 + $0x88] sm:$0xff]  ;;  %v197_v63 = vld [vmem:[#allocation5 + $0x98] sm:$0xff] }
 0x15a   : > { %v428_v7 = vmul.f32 0.044715, %v2492_v1  ;;  %v456_v8 = vmul.f32 0.7978846, %v448_v3  ;;  %v442_v9 = vmul.f32 %v434_v0, %v2479_v51  ;;  %v418_v43 = vmul.f32 0.5, %v2479_v51  ;;  %v198_v0 = vld [vmem:[#allocation5 + $0xa0] sm:$0xff] }
 0x15b   : > { %v427_v10 = vmul.f32 0.044715, %v405_v5  ;;  %v455_v11 = vmul.f32 0.7978846, %v447_v6  ;;  %v441_v12 = vmul.f32 %v433_v4, %v2484_v55  ;;  %v419_v54 = vmul.f32 0.5, %v405_v5  ;;  %v199_v2 = vld [vmem:[#allocation5 + $0xa8] sm:$0xff] }
 0x15c   : > { %v436_v13 = vmul.f32 %v428_v7, %v2492_v1  ;;  %2102 = vtanh.f32 %v456_v8  ;;  %v450_v14 = vadd.f32 %v442_v9, %v2479_v51  ;;  %v2274_v51 = vmov 0.0|0.0   ;;  %v200_v3 = vld [vmem:[#allocation5 + $0xb0] sm:$0xff]  ;;  %v202_v6 = vld [vmem:[#allocation5 + $0xc0] sm:$0xff]  ;;  %v203_v8 = vld [vmem:[#allocation5 + $0xc8] sm:$0xff] }
 0x15d   : > { %v435_v15 = vmul.f32 %v427_v10, %v405_v5  ;;  %2104 = vtanh.f32 %v455_v11  ;;  %v449_v16 = vadd.f32 %v441_v12, %v2484_v55  ;;  %v420_v55 = vmul.f32 0.5, %v2492_v1  ;;  %1880 = vmatprep.subr.bf16.mxu0 %v2274_v51  ;;  %1892 = vmatprep.subr.bf16.mxu1 %v2274_v51  ;;  %v204_v9 = vld [vmem:[#allocation5 + $0xd0] sm:$0xff]  ;;  %v205_v11 = vld [vmem:[#allocation5 + $0xd8] sm:$0xff]  ;;  %v206_v12 = vld [vmem:[#allocation5 + $0xe0] sm:$0xff] }
 0x15e   : > { %v458_v17 = vmul.f32 0.7978846, %v450_v14  ;;  %v444_v18 = vmul.f32 %v436_v13, %v2492_v1  ;;  %v2276_v59 = vmov 0.0   ;;  %v1893_v62 = vpack.c.bf16 %v196_v61, %v195_v60  ;;  %v207_v14 = vld [vmem:[#allocation5 + $0xe8] sm:$0xff] }
 0x15f   : > { %v457_v19 = vmul.f32 0.7978846, %v449_v16  ;;  %v443_v20 = vmul.f32 %v435_v15, %v405_v5  ;;  %1603 = vmatprep.mubr.msk.f32.mxu0 %vm2275_vm0, %v2276_v59  ;;  %v1899_v4 = vpack.c.bf16 %v200_v3, %v199_v2  ;;  %v1905_v10 = vpack.c.bf16 %v204_v9, %v203_v8  ;;  %v208_v15 = vld [vmem:[#allocation5 + $0xf0] sm:$0xff] }
 0x160   : > { %2106 = vtanh.f32 %v458_v17  ;;  %v452_v21 = vadd.f32 %v444_v18, %v2492_v1  ;;  %v1896_v1 = vpack.c.bf16 %v198_v0, %v197_v63  ;;  %v1908_v13 = vpack.c.bf16 %v206_v12, %v205_v11  ;;  %v209_v17 = vld [vmem:[#allocation5 + $0xf8] sm:$0xff]  ;;  %v210_v18 = vld [vmem:[#allocation5 + $0x100] sm:$0xff] }
 0x161   : > { %2108 = vtanh.f32 %v457_v19  ;;  %v451_v22 = vadd.f32 %v443_v20, %v405_v5  ;;  %v201_v5 = vld [vmem:[#allocation5 + $0xb8] sm:$0xff]  ;;  %v1911_v16 = vpack.c.bf16 %v208_v15, %v207_v14  ;;  %v1914_v19 = vpack.c.bf16 %v210_v18, %v209_v17 }
 0x162   : > { %v2099_v23 = vpop.eup %2098  ;;  %v460_v24 = vmul.f32 0.7978846, %v452_v21  ;;  %v1902_v7 = vpack.c.bf16 %v202_v6, %v201_v5 }
 0x163   : > { %v2101_v25 = vpop.eup %2100  ;;  %v470_v26 = vadd.f32 1.0, %v2099_v23  ;;  %v459_v27 = vmul.f32 0.7978846, %v451_v22 }
 0x164   : > { %v469_v29 = vadd.f32 1.0, %v2101_v25  ;;  %2110 = vtanh.f32 %v460_v24 }
 0x165   : > { %2112 = vtanh.f32 %v459_v27  ;;  %v2509_v37 = vmul.f32 %v470_v26, %v414_v30 }
 0x166   : > { %v2103_v31 = vpop.eup %2102  ;;  %v2507_v33 = vmul.f32 %v469_v29, %v413_v28 }
 0x167   : > { %v2105_v35 = vpop.eup %2104  ;;  %v472_v38 = vadd.f32 1.0, %v2103_v31 }
 0x168   : > { %1575 = vmatprep.mubr.f32.mxu1 %v2507_v33  ;;  %v471_v40 = vadd.f32 1.0, %v2105_v35 }
 0x169   : > { %1576 = vmatmul.mubr.f32.vlgmr.msra.gmra.mrb[0].mxu1 %v2509_v37  ;;  %v2517_v45 = vmul.f32 %v472_v38, %v416_v36 }
 0x16a   : > { %v2107_v42 = vpop.eup %2106  ;;  %v2515_v44 = vmul.f32 %v471_v40, %v415_v39  ;;  %1894 = vmatpush3.bf16.msra.mxu1 %v1893_v62 }
 0x16b   : > { %v2109_v34 = vpop.eup %2108  ;;  %v474_v46 = vadd.f32 1.0, %v2107_v42  ;;  %1895 = vmatprep.subr.bf16.mxu1 %v2274_v51 }
 0x16c   : > { %1578 = vmatprep.mubr.f32.mxu1 %v2515_v44  ;;  %v473_v48 = vadd.f32 1.0, %v2109_v34 }
 0x16d   : > { %1579 = vmatmul.mubr.f32.gmra.mrb[2].mxu1 %v2517_v45  ;;  %v2525_v52 = vmul.f32 %v474_v46, %v418_v43 }
 0x16e   : > { %v2111_v49 = vpop.eup %2110  ;;  %v2523_v50 = vmul.f32 %v473_v48, %v417_v47  ;;  %1897 = vmatpush3.bf16.msra.mxu1 %v1896_v1 }
 0x16f   : > { %v2113_v41 = vpop.eup %2112  ;;  %v476_v53 = vadd.f32 1.0, %v2111_v49  ;;  %1898 = vmatprep.subr.bf16.mxu1 %v2274_v51 }
 0x170   : > { %1581 = vmatprep.mubr.f32.mxu1 %v2523_v50  ;;  %v475_v56 = vadd.f32 1.0, %v2113_v41 }
 0x171   : > { %1582 = vmatmul.mubr.f32.gmra.mrb[4].mxu1 %v2525_v52  ;;  %v2532_v58 = vmul.f32 %v476_v53, %v420_v55 }
 0x172   : > { %v2530_v57 = vmul.f32 %v475_v56, %v419_v54  ;;  %1900 = vmatpush3.bf16.msra.mxu1 %v1899_v4 }
 0x173   : > { %1901 = vmatprep.subr.bf16.mxu1 %v2274_v51 }
 0x174   : > { %1584 = vmatprep.mubr.f32.mxu1 %v2530_v57 }
 0x175   : > { %1585 = vmatmul.mubr.f32.gmra.mrb[6].mxu1 %v2532_v58 }
 0x176   : > { %1638 = vmatprep.mubr.msk.f32.mxu1 %vm2275_vm0, %v2276_v59  ;;  %1903 = vmatpush3.bf16.msra.mxu1 %v1902_v7 }
 0x177   : > { %1904 = vmatprep.subr.bf16.mxu1 %v2274_v51 }
 0x17a   : > { %1906 = vmatpush3.bf16.msra.mxu1 %v1905_v10 }
 0x17b   : > { %1907 = vmatprep.subr.bf16.mxu1 %v2274_v51 }
 0x17e   : > { %1909 = vmatpush3.bf16.msra.mxu1 %v1908_v13 }
 0x17f   : > { %1910 = vmatprep.subr.bf16.mxu1 %v2274_v51 }
 0x182   : > { %1912 = vmatpush3.bf16.msra.mxu1 %v1911_v16 }
 0x183   : > { %1913 = vmatprep.subr.bf16.mxu1 %v2274_v51 }
 0x186   : > { %1915 = vmatpush3.bf16.msra.mxu1 %v1914_v19 }
 0x187   : > { %1940 = vmatprep.subr.bf16.mxu1 %v2274_v51 }
 0x23c   : > { %v1577_v20 = vpop.f32.mrb[0].mxu1 }
 0x23d   : > { %v565_v21 = vadd.f32 %v1577_v20, %v2460_v32  ;;  %v559_v22 = vpop.f32.mrb[1].mxu1 }
 0x23e   : > { %v560_v23 = vadd.f32 %v2460_v32, %v559_v22 }
 0x23f   : > { %v607_v24 = vmul.f32 0.044715, %v565_v21 }
 0x240   : > { %v606_v25 = vmul.f32 0.044715, %v560_v23  ;;  %v1580_v26 = vpop.f32.mrb[2].mxu1 }
 0x241   : > { %v615_v27 = vmul.f32 %v607_v24, %v565_v21  ;;  %v2553_v28 = vadd.f32 %v1580_v26, %v2460_v32  ;;  %v569_v29 = vpop.f32.mrb[3].mxu1 }
 0x242   : > { %v614_v30 = vmul.f32 %v606_v25, %v560_v23  ;;  %v2556_v31 = vadd.f32 %v2460_v32, %v569_v29  ;;  %v599_v25 = vmul.f32 0.5, %v565_v21  ;;  %v598_v29 = vmul.f32 0.5, %v560_v23 }
 0x243   : > { %v623_v35 = vmul.f32 %v615_v27, %v565_v21  ;;  %v609_v38 = vmul.f32 0.044715, %v2553_v28 }
 0x244   : > { %v622_v39 = vmul.f32 %v614_v30, %v560_v23  ;;  %v608_v40 = vmul.f32 0.044715, %v2556_v31  ;;  %v1583_v36 = vpop.f32.mrb[4].mxu1 }
 0x245   : > { %v631_v42 = vadd.f32 %v623_v35, %v565_v21  ;;  %v617_v34 = vmul.f32 %v609_v38, %v2553_v28  ;;  %v2562_v46 = vadd.f32 %v1583_v36, %v2460_v32  ;;  %v579_v47 = vpop.f32.mrb[5].mxu1  ;;  %v601_v36 = vmul.f32 0.5, %v2553_v28 }
 0x246   : > { %v630_v48 = vadd.f32 %v622_v39, %v560_v23  ;;  %v616_v43 = vmul.f32 %v608_v40, %v2556_v31  ;;  %v2566_v49 = vadd.f32 %v2460_v32, %v579_v47  ;;  %v600_v47 = vmul.f32 0.5, %v2556_v31 }
 0x247   : > { %v639_v41 = vmul.f32 0.7978846, %v631_v42  ;;  %v625_v53 = vmul.f32 %v617_v34, %v2553_v28  ;;  %v611_v54 = vmul.f32 0.044715, %v2562_v46 }
 0x248   : > { %v638_v56 = vmul.f32 0.7978846, %v630_v48  ;;  %v624_v55 = vmul.f32 %v616_v43, %v2556_v31  ;;  %v610_v60 = vmul.f32 0.044715, %v2566_v49  ;;  %v1586_v61 = vpop.f32.mrb[6].mxu1 }
 0x249   : > { %2114 = vtanh.f32 %v639_v41  ;;  %v633_v62 = vadd.f32 %v625_v53, %v2553_v28  ;;  %v619_v63 = vmul.f32 %v611_v54, %v2562_v46  ;;  %v2575_v0 = vadd.f32 %v1586_v61, %v2460_v32  ;;  %v589_v1 = vpop.f32.mrb[7].mxu1 }
 0x24a   : > { %2116 = vtanh.f32 %v638_v56  ;;  %v632_v2 = vadd.f32 %v624_v55, %v2556_v31  ;;  %v618_v3 = vmul.f32 %v610_v60, %v2566_v49  ;;  %v590_v4 = vadd.f32 %v2460_v32, %v589_v1 }
 0x24b   : > { %v641_v5 = vmul.f32 0.7978846, %v633_v62  ;;  %v627_v6 = vmul.f32 %v619_v63, %v2562_v46  ;;  %v613_v7 = vmul.f32 0.044715, %v2575_v0  ;;  %v603_v56 = vmul.f32 0.5, %v2562_v46 }
 0x24c   : > { %v640_v8 = vmul.f32 0.7978846, %v632_v2  ;;  %v626_v9 = vmul.f32 %v618_v3, %v2566_v49  ;;  %v612_v10 = vmul.f32 0.044715, %v590_v4  ;;  %v602_v28 = vmul.f32 0.5, %v2566_v49 }
 0x24d   : > { %2118 = vtanh.f32 %v641_v5  ;;  %v635_v11 = vadd.f32 %v627_v6, %v2562_v46  ;;  %v621_v12 = vmul.f32 %v613_v7, %v2575_v0  ;;  %v605_v2 = vmul.f32 0.5, %v2575_v0 }
 0x24e   : > { %2120 = vtanh.f32 %v640_v8  ;;  %v634_v13 = vadd.f32 %v626_v9, %v2566_v49  ;;  %v620_v14 = vmul.f32 %v612_v10, %v590_v4 }
 0x24f   : > { %v643_v15 = vmul.f32 0.7978846, %v635_v11  ;;  %v629_v32 = vmul.f32 %v621_v12, %v2575_v0  ;;  %v213_v11 = vld [vmem:[#allocation5 + $0x118] sm:$0xff]  ;;  %v214_v12 = vld [vmem:[#allocation5 + $0x120] sm:$0xff] }
 0x250   : > { %v642_v16 = vmul.f32 0.7978846, %v634_v13  ;;  %v628_v17 = vmul.f32 %v620_v14, %v590_v4  ;;  %v1920_v13 = vpack.c.bf16 %v214_v12, %v213_v11  ;;  %v242_v11 = vld [vmem:[#allocation5 + $0x200] sm:$0xff] }
 0x251   : > { %2122 = vtanh.f32 %v643_v15  ;;  %v637_v18 = vadd.f32 %v629_v32, %v2575_v0  ;;  %v211_v0 = vld [vmem:[#allocation5 + $0x108] sm:$0xff]  ;;  %v217_v15 = vld [vmem:[#allocation5 + $0x138] sm:$0xff]  ;;  %v218_v32 = vld [vmem:[#allocation5 + $0x140] sm:$0xff] }
 0x252   : > { %2124 = vtanh.f32 %v642_v16  ;;  %v636_v19 = vadd.f32 %v628_v17, %v590_v4  ;;  %v1926_v16 = vpack.c.bf16 %v218_v32, %v217_v15  ;;  %v219_v17 = vld [vmem:[#allocation5 + $0x148] sm:$0xff]  ;;  %v244_v15 = vld [vmem:[#allocation5 + $0x210] sm:$0xff] }
 0x253   : > { %v2115_v20 = vpop.eup %2114  ;;  %v645_v22 = vmul.f32 0.7978846, %v637_v18  ;;  %v220_v18 = vld [vmem:[#allocation5 + $0x150] sm:$0xff] }
 0x254   : > { %v2117_v24 = vpop.eup %2116  ;;  %v644_v26 = vmul.f32 0.7978846, %v636_v19  ;;  %v655_v27 = vadd.f32 1.0, %v2115_v20  ;;  %v1929_v19 = vpack.c.bf16 %v220_v18, %v219_v17  ;;  %v221_v20 = vld [vmem:[#allocation5 + $0x158] sm:$0xff]  ;;  %v1331_v17 = vld [vmem:[#allocation5 + $0x188] ss:$0 sm:$0xff] }
 0x255   : > { %2126 = vtanh.f32 %v645_v22  ;;  %v654_v30 = vadd.f32 1.0, %v2117_v24  ;;  %v222_v22 = vld [vmem:[#allocation5 + $0x160] sm:$0xff]  ;;  %v1332_v18 = vld [vmem:[#allocation5 + $0x190] ss:$0 sm:$0xff] }
 0x256   : > { %2128 = vtanh.f32 %v644_v26  ;;  %v663_v35 = vmul.f32 %v655_v27, %v599_v25  ;;  %v1932_v24 = vpack.c.bf16 %v222_v22, %v221_v20  ;;  %v223_v25 = vld [vmem:[#allocation5 + $0x168] sm:$0xff]  ;;  %v224_v26 = vld [vmem:[#allocation5 + $0x170] sm:$0xff] }
 0x257   : > { %v2119_v38 = vpop.eup %2118  ;;  %v662_v39 = vmul.f32 %v654_v30, %v598_v29  ;;  %v1935_v27 = vpack.c.bf16 %v224_v26, %v223_v25  ;;  %v225_v29 = vld [vmem:[#allocation5 + $0x178] sm:$0xff]  ;;  %v226_v30 = vld [vmem:[#allocation5 + $0x180] sm:$0xff] }
 0x258   : > { %v2121_v40 = vpop.eup %2120  ;;  %v671_v42 = vadd.f32 %v663_v35, %v2509_v37  ;;  %v657_v34 = vadd.f32 1.0, %v2119_v38  ;;  %v1938_v35 = vpack.c.bf16 %v226_v30, %v225_v29  ;;  %v245_v38 = vld [vmem:[#allocation5 + $0x218] sm:$0xff] }
 0x259   : > { %v670_v48 = vadd.f32 %v662_v39, %v2507_v33  ;;  %v656_v21 = vadd.f32 1.0, %v2121_v40  ;;  %v246_v39 = vld [vmem:[#allocation5 + $0x220] sm:$0xff]  ;;  %v229_v40 = vld [vmem:[#allocation5 + $0x198] sm:$0xff] }
 0x25a   : > { %v665_v43 = vmul.f32 %v657_v34, %v601_v36  ;;  %v230_v36 = vld [vmem:[#allocation5 + $0x1a0] sm:$0xff] }
 0x25b   : > { %v2123_v41 = vpop.eup %2122  ;;  %v1881_v23 = vpack.c.bf16 %v671_v42, %v670_v48  ;;  %v664_v53 = vmul.f32 %v656_v21, %v600_v47  ;;  %v1941_v42 = vpack.c.bf16 %v246_v39, %v245_v38  ;;  %v1965_v34 = vpack.c.bf16 %v230_v36, %v229_v40  ;;  %v247_v21 = vld [vmem:[#allocation5 + $0x228] sm:$0xff] }
 0x25c   : > { %v2125_v54 = vpop.eup %2124  ;;  %v673_v55 = vadd.f32 %v665_v43, %v2517_v45  ;;  %v659_v60 = vadd.f32 1.0, %v2123_v41  ;;  %v604_v45 = vmul.f32 0.5, %v590_v4  ;;  %v295_v4 = vld [vmem:[#allocation5 + $0x328] sm:$0xff]  ;;  %v248_v43 = vld [vmem:[#allocation5 + $0x230] sm:$0xff] }
 0x25d   : > { %1882 = vmatpush3.bf16.msra.mxu0 %v1881_v23  ;;  %v672_v37 = vadd.f32 %v664_v53, %v2515_v44  ;;  %v658_v61 = vadd.f32 1.0, %v2125_v54  ;;  %v231_v41 = vld [vmem:[#allocation5 + $0x1a8] sm:$0xff]  ;;  %v1944_v23 = vpack.c.bf16 %v248_v43, %v247_v21  ;;  %v232_v53 = vld [vmem:[#allocation5 + $0x1b0] sm:$0xff] }
 0x25e   : > { %1883 = vmatprep.subr.bf16.mxu0 %v2274_v51  ;;  %v667_v33 = vmul.f32 %v659_v60, %v603_v56  ;;  %v1968_v54 = vpack.c.bf16 %v232_v53, %v231_v41  ;;  %v249_v56 = vld [vmem:[#allocation5 + $0x238] sm:$0xff] }
 0x25f   : > { %v2127_v31 = vpop.eup %2126  ;;  %v1884_v62 = vpack.c.bf16 %v673_v55, %v672_v37  ;;  %v666_v63 = vmul.f32 %v658_v61, %v602_v28  ;;  %v250_v55 = vld [vmem:[#allocation5 + $0x240] sm:$0xff]  ;;  %v233_v60 = vld [vmem:[#allocation5 + $0x1b8] sm:$0xff] }
 0x260   : > { %v2129_v1 = vpop.eup %2128  ;;  %v675_v46 = vadd.f32 %v667_v33, %v2525_v52  ;;  %v661_v3 = vadd.f32 1.0, %v2127_v31  ;;  %v212_v52 = vld [vmem:[#allocation5 + $0x110] sm:$0xff]  ;;  %v1947_v28 = vpack.c.bf16 %v250_v55, %v249_v56  ;;  %v234_v37 = vld [vmem:[#allocation5 + $0x1c0] sm:$0xff]  ;;  %v251_v33 = vld [vmem:[#allocation5 + $0x248] sm:$0xff] }
 0x261   : > { %1885 = vmatpush3.bf16.msra.mxu0 %v1884_v62  ;;  %v674_v49 = vadd.f32 %v666_v63, %v2523_v50  ;;  %v660_v5 = vadd.f32 1.0, %v2129_v1  ;;  %v1917_v50 = vpack.c.bf16 %v212_v52, %v211_v0  ;;  %v1971_v61 = vpack.c.bf16 %v234_v37, %v233_v60  ;;  %v252_v31 = vld [vmem:[#allocation5 + $0x250] sm:$0xff]  ;;  %v235_v62 = vld [vmem:[#allocation5 + $0x1c8] sm:$0xff]  ;;  %v265_v37 = vld [vmem:[#allocation5 + $0x2b8] sm:$0xff] }
 0x262   : > { %1886 = vmatprep.subr.bf16.mxu0 %v2274_v51  ;;  %v669_v44 = vmul.f32 %v661_v3, %v605_v2  ;;  %v1950_v63 = vpack.c.bf16 %v252_v31, %v251_v33  ;;  %v236_v1 = vld [vmem:[#allocation5 + $0x1d0] sm:$0xff]  ;;  %v254_v3 = vld [vmem:[#allocation5 + $0x260] sm:$0xff]  ;;  %v267_v31 = vld [vmem:[#allocation5 + $0x2c8] sm:$0xff] }
 0x263   : > { %v1887_v6 = vpack.c.bf16 %v675_v46, %v674_v49  ;;  %v668_v7 = vmul.f32 %v660_v5, %v604_v45  ;;  %v1974_v2 = vpack.c.bf16 %v236_v1, %v235_v62  ;;  %v253_v46 = vld [vmem:[#allocation5 + $0x258] sm:$0xff]  ;;  %v238_v5 = vld [vmem:[#allocation5 + $0x1e0] sm:$0xff] }
 0x264   : > { %v677_v8 = vadd.f32 %v669_v44, %v2532_v58  ;;  %v216_v58 = vld [vmem:[#allocation5 + $0x130] sm:$0xff]  ;;  %v237_v45 = vld [vmem:[#allocation5 + $0x1d8] sm:$0xff]  ;;  %v1953_v49 = vpack.c.bf16 %v254_v3, %v253_v46  ;;  %v255_v44 = vld [vmem:[#allocation5 + $0x268] sm:$0xff] }
 0x265   : > { %1888 = vmatpush3.bf16.msra.mxu0 %v1887_v6  ;;  %v676_v9 = vadd.f32 %v668_v7, %v2530_v57  ;;  %v215_v57 = vld [vmem:[#allocation5 + $0x128] sm:$0xff]  ;;  %v256_v6 = vld [vmem:[#allocation5 + $0x270] sm:$0xff]  ;;  %v1977_v7 = vpack.c.bf16 %v238_v5, %v237_v45  ;;  %v266_v33 = vld [vmem:[#allocation5 + $0x2c0] sm:$0xff] }
 0x266   : > { %1889 = vmatprep.subr.bf16.mxu0 %v2274_v51  ;;  %v1923_v14 = vpack.c.bf16 %v216_v58, %v215_v57  ;;  %v1956_v0 = vpack.c.bf16 %v256_v6, %v255_v44  ;;  %v259_v57 = vld [vmem:[#allocation5 + $0x288] sm:$0xff]  ;;  %v260_v58 = vld [vmem:[#allocation5 + $0x290] sm:$0xff]  ;;  %v1995_v62 = vpack.c.bf16 %v267_v31, %v266_v33  ;;  %v269_v1 = vld [vmem:[#allocation5 + $0x2d8] sm:$0xff] }
 0x267   : > { %v1890_v10 = vpack.c.bf16 %v677_v8, %v676_v9  ;;  %v239_v8 = vld [vmem:[#allocation5 + $0x1e8] sm:$0xff]  ;;  %v240_v9 = vld [vmem:[#allocation5 + $0x1f0] sm:$0xff]  ;;  %v1962_v32 = vpack.c.bf16 %v260_v58, %v259_v57  ;;  %v270_v46 = vld [vmem:[#allocation5 + $0x2e0] sm:$0xff] }
 0x268   : > { %v1980_v52 = vpack.c.bf16 %v240_v9, %v239_v8  ;;  %v271_v3 = vld [vmem:[#allocation5 + $0x2e8] sm:$0xff]  ;;  %v274_v44 = vld [vmem:[#allocation5 + $0x300] sm:$0xff]  ;;  %v276_v8 = vld [vmem:[#allocation5 + $0x310] sm:$0xff] }
 0x269   : > { %1891 = vmatpush3.bf16.msra.mxu0 %v1890_v10  ;;  %v257_v10 = vld [vmem:[#allocation5 + $0x278] sm:$0xff]  ;;  %v2001_v45 = vpack.c.bf16 %v271_v3, %v270_v46  ;;  %v275_v6 = vld [vmem:[#allocation5 + $0x308] sm:$0xff] }
 0x26a   : > { %1916 = vmatprep.subr.bf16.mxu0 %v2274_v51  ;;  %v277_v9 = vld [vmem:[#allocation5 + $0x318] sm:$0xff] }
 0x26c   : > { %1604 = vmatmul.mubr.msk.f32.vlgmr.msra.gmra.mrb[8].mxu0 %vm678_vm1, %v295_v4  ;;  %v258_v4 = vld [vmem:[#allocation5 + $0x280] sm:$0xff] }
 0x26d   : > { %1918 = vmatpush3.bf16.msra.mxu0 %v1917_v50  ;;  %1673 = vmatprep.mubr.msk.f32.mxu0 %vm2275_vm0, %v2276_v59  ;;  %v241_v50 = vld [vmem:[#allocation5 + $0x1f8] sm:$0xff]  ;;  %v1959_v12 = vpack.c.bf16 %v258_v4, %v257_v10 }
 0x26e   : > { %1919 = vmatprep.subr.bf16.mxu0 %v2274_v51  ;;  %v1333_v10 = vld [vmem:[#allocation5 + $0x298] ss:$0 sm:$0xff] }
 0x271   : > { %1921 = vmatpush3.bf16.msra.mxu0 %v1920_v13  ;;  %v1983_v13 = vpack.c.bf16 %v242_v11, %v241_v50 }
 0x272   : > { %1922 = vmatprep.subr.bf16.mxu0 %v2274_v51 }
 0x275   : > { %1924 = vmatpush3.bf16.msra.mxu0 %v1923_v14  ;;  %v243_v14 = vld [vmem:[#allocation5 + $0x208] sm:$0xff] }
 0x276   : > { %1925 = vmatprep.subr.bf16.mxu0 %v2274_v51 }
 0x279   : > { %1927 = vmatpush3.bf16.msra.mxu0 %v1926_v16  ;;  %v1986_v16 = vpack.c.bf16 %v244_v15, %v243_v14 }
 0x27a   : > { %1928 = vmatprep.subr.bf16.mxu0 %v2274_v51 }
 0x27d   : > { %1930 = vmatpush3.bf16.msra.mxu0 %v1929_v19 }
 0x27e   : > { %1931 = vmatprep.subr.bf16.mxu0 %v2274_v51 }
 0x281   : > { %1933 = vmatpush3.bf16.msra.mxu0 %v1932_v24 }
 0x282   : > { %1934 = vmatprep.subr.bf16.mxu0 %v2274_v51 }
 0x285   : > { %1936 = vmatpush3.bf16.msra.mxu0 %v1935_v27 }
 0x286   : > { %1937 = vmatprep.subr.bf16.mxu0 %v2274_v51 }
 0x289   : > { %1939 = vmatpush3.bf16.msra.mxu0 %v1938_v35 }
 0x28a   : > { %1964 = vmatprep.subr.bf16.mxu0 %v2274_v51 }
 0x33f   : > { %v748_v47 = vpop.f32.mrb[8].mxu0 }
 0x340   : > { %v1605_v48 = vpop.f32.mrb[9].mxu0  ;;  %1639 = vmatmul.mubr.f32.vlgmr.msra.gmra.mrb[8].mxu1 %v748_v47  ;;  %1674 = vmatmul.mubr.f32.vlgmr.msra.gmra.mrb[10].mxu0 %v748_v47  ;;  %v262_v47 = vld [vmem:[#allocation5 + $0x2a0] sm:$0xff] }
 0x341   : > { %1942 = vmatpush3.bf16.msra.mxu1 %v1941_v42  ;;  %1966 = vmatpush3.bf16.msra.mxu0 %v1965_v34  ;;  %v263_v48 = vld [vmem:[#allocation5 + $0x2a8] sm:$0xff] }
 0x342   : > { %1943 = vmatprep.subr.bf16.mxu1 %v2274_v51  ;;  %1967 = vmatprep.subr.bf16.mxu0 %v2274_v51  ;;  %v1989_v56 = vpack.c.bf16 %v263_v48, %v262_v47  ;;  %v287_v48 = vld [vmem:[#allocation5 + $0x370] sm:$0xff] }
 0x343   : > { %1708 = vmatprep.mubr.msk.f32.mxu1 %vm2275_vm0, %v2276_v59  ;;  %1743 = vmatprep.mubr.msk.f32.mxu0 %vm2275_vm0, %v2276_v59 }
 0x345   : > { %1945 = vmatpush3.bf16.msra.mxu1 %v1944_v23  ;;  %1969 = vmatpush3.bf16.msra.mxu0 %v1968_v54 }
 0x346   : > { %1946 = vmatprep.subr.bf16.mxu1 %v2274_v51  ;;  %1970 = vmatprep.subr.bf16.mxu0 %v2274_v51 }
 0x349   : > { %1948 = vmatpush3.bf16.msra.mxu1 %v1947_v28  ;;  %1972 = vmatpush3.bf16.msra.mxu0 %v1971_v61  ;;  %v264_v28 = vld [vmem:[#allocation5 + $0x2b0] sm:$0xff] }
 0x34a   : > { %1949 = vmatprep.subr.bf16.mxu1 %v2274_v51  ;;  %1973 = vmatprep.subr.bf16.mxu0 %v2274_v51  ;;  %v1992_v61 = vpack.c.bf16 %v265_v37, %v264_v28  ;;  %v294_v28 = vld [vmem:[#allocation5 + $0x3a8] sm:$0xff] }
 0x34d   : > { %1951 = vmatpush3.bf16.msra.mxu1 %v1950_v63  ;;  %1975 = vmatpush3.bf16.msra.mxu0 %v1974_v2  ;;  %v268_v63 = vld [vmem:[#allocation5 + $0x2d0] sm:$0xff] }
 0x34e   : > { %1952 = vmatprep.subr.bf16.mxu1 %v2274_v51  ;;  %1976 = vmatprep.subr.bf16.mxu0 %v2274_v51  ;;  %v1998_v2 = vpack.c.bf16 %v269_v1, %v268_v63 }
 0x351   : > { %1954 = vmatpush3.bf16.msra.mxu1 %v1953_v49  ;;  %1978 = vmatpush3.bf16.msra.mxu0 %v1977_v7  ;;  %v273_v49 = vld [vmem:[#allocation5 + $0x2f8] sm:$0xff]  ;;  %v2007_v7 = vpack.c.bf16 %v275_v6, %v274_v44 }
 0x352   : > { %1955 = vmatprep.subr.bf16.mxu1 %v2274_v51  ;;  %1979 = vmatprep.subr.bf16.mxu0 %v2274_v51 }
 0x355   : > { %1957 = vmatpush3.bf16.msra.mxu1 %v1956_v0  ;;  %1981 = vmatpush3.bf16.msra.mxu0 %v1980_v52  ;;  %v2010_v0 = vpack.c.bf16 %v277_v9, %v276_v8 }
 0x356   : > { %1958 = vmatprep.subr.bf16.mxu1 %v2274_v51  ;;  %1982 = vmatprep.subr.bf16.mxu0 %v2274_v51 }
 0x359   : > { %1960 = vmatpush3.bf16.msra.mxu1 %v1959_v12  ;;  %1984 = vmatpush3.bf16.msra.mxu0 %v1983_v13 }
 0x35a   : > { %1961 = vmatprep.subr.bf16.mxu1 %v2274_v51  ;;  %1985 = vmatprep.subr.bf16.mxu0 %v2274_v51 }
 0x35d   : > { %1963 = vmatpush3.bf16.msra.mxu1 %v1962_v32  ;;  %1987 = vmatpush3.bf16.msra.mxu0 %v1986_v16 }
 0x35e   : > { %1988 = vmatprep.subr.bf16.mxu1 %v2274_v51  ;;  %2012 = vmatprep.subr.bf16.mxu0 %v2274_v51 }
 0x413   : > { %v822_v19 = vpop.f32.mrb[8].mxu1  ;;  %v905_v20 = vpop.f32.mrb[10].mxu0 }
 0x414   : > { %v823_v22 = vadd.f32 %v1331_v17, %v822_v19  ;;  %v906_v24 = vadd.f32 %v1332_v18, %v905_v20  ;;  %v1640_v25 = vpop.f32.mrb[9].mxu1  ;;  %v1675_v26 = vpop.f32.mrb[11].mxu0  ;;  %v279_v20 = vld [vmem:[#allocation5 + $0x330] sm:$0xff] }
 0x415   : > { %v282_v26 = vld [vmem:[#allocation5 + $0x348] sm:$0xff] }
 0x416   : > { %v827_v27 = vmul.f32 0.044715, %v823_v22  ;;  %v910_v29 = vmul.f32 0.044715, %v906_v24  ;;  %v909_v41 = vmul.f32 0.5, %v906_v24  ;;  %v826_v53 = vmul.f32 0.5, %v823_v22 }
 0x418   : > { %v828_v30 = vmul.f32 %v827_v27, %v823_v22  ;;  %v911_v35 = vmul.f32 %v910_v29, %v906_v24  ;;  %v283_v29 = vld [vmem:[#allocation5 + $0x350] sm:$0xff] }
 0x41a   : > { %v829_v38 = vmul.f32 %v828_v30, %v823_v22  ;;  %v912_v39 = vmul.f32 %v911_v35, %v906_v24  ;;  %v284_v30 = vld [vmem:[#allocation5 + $0x358] sm:$0xff] }
 0x41b   : > { %v2019_v35 = vpack.c.bf16 %v284_v30, %v283_v29 }
 0x41c   : > { %v830_v40 = vadd.f32 %v829_v38, %v823_v22  ;;  %v913_v36 = vadd.f32 %v912_v39, %v906_v24  ;;  %v280_v22 = vld [vmem:[#allocation5 + $0x338] sm:$0xff]  ;;  %v281_v24 = vld [vmem:[#allocation5 + $0x340] sm:$0xff]  ;;  %v286_v39 = vld [vmem:[#allocation5 + $0x368] sm:$0xff] }
 0x41d   : > { %v2013_v25 = vpack.c.bf16 %v280_v22, %v279_v20  ;;  %v2016_v27 = vpack.c.bf16 %v282_v26, %v281_v24  ;;  %v285_v38 = vld [vmem:[#allocation5 + $0x360] sm:$0xff] }
 0x41e   : > { %v914_v42 = vmul.f32 0.7978846, %v913_v36  ;;  %v831_v34 = vmul.f32 0.7978846, %v830_v40  ;;  %v2022_v40 = vpack.c.bf16 %v286_v39, %v285_v38  ;;  %v1334_v36 = vld [vmem:[#allocation5 + $0x320] ss:$0 sm:$0xff] }
 0x420   : > { %2130 = vtanh.f32 %v914_v42 }
 0x421   : > { %2132 = vtanh.f32 %v831_v34 }
 0x42a   : > { %v2131_v21 = vpop.eup %2130 }
 0x42b   : > { %v2133_v43 = vpop.eup %2132  ;;  %v916_v23 = vadd.f32 1.0, %v2131_v21  ;;  %v288_v21 = vld [vmem:[#allocation5 + $0x378] sm:$0xff] }
 0x42c   : > { %v833_v54 = vadd.f32 1.0, %v2133_v43  ;;  %v2025_v43 = vpack.c.bf16 %v288_v21, %v287_v48 }
 0x42d   : > { %v917_v55 = vmul.f32 %v916_v23, %v909_v41  ;;  %v289_v41 = vld [vmem:[#allocation5 + $0x380] sm:$0xff]  ;;  %v290_v23 = vld [vmem:[#allocation5 + $0x388] sm:$0xff] }
 0x42e   : > { %v834_v60 = vmul.f32 %v833_v54, %v826_v53  ;;  %v2028_v53 = vpack.c.bf16 %v290_v23, %v289_v41  ;;  %v291_v54 = vld [vmem:[#allocation5 + $0x390] sm:$0xff] }
 0x42f   : > { %1709 = vmatmul.mubr.f32.vlgmr.msra.gmra.mrb[10].mxu1 %v917_v55 }
 0x430   : > { %1744 = vmatmul.mubr.f32.vlgmr.msra.gmra.mrb[12].mxu0 %v834_v60  ;;  %1990 = vmatpush3.bf16.msra.mxu1 %v1989_v56  ;;  %v292_v56 = vld [vmem:[#allocation5 + $0x398] sm:$0xff]  ;;  %v293_v60 = vld [vmem:[#allocation5 + $0x3a0] sm:$0xff] }
 0x431   : > { %1991 = vmatprep.subr.bf16.mxu1 %v2274_v51  ;;  %1778 = vmatprep.mubr.msk.f32.mxu1 %vm2275_vm0, %v2276_v59  ;;  %v2031_v55 = vpack.c.bf16 %v292_v56, %v291_v54  ;;  %v2034_v37 = vpack.c.bf16 %v294_v28, %v293_v60 }
 0x432   : > { %1813 = vmatprep.mubr.msk.f32.mxu0 %vm2275_vm0, %v2276_v59  ;;  %v272_v59 = vld [vmem:[#allocation5 + $0x2f0] sm:$0xff]  ;;  %2014 = vmatpush3.bf16.msra.mxu0 %v2013_v25 }
 0x433   : > { %v2004_v5 = vpack.c.bf16 %v273_v49, %v272_v59  ;;  %2015 = vmatprep.subr.bf16.mxu0 %v2274_v51 }
 0x434   : > { %1993 = vmatpush3.bf16.msra.mxu1 %v1992_v61 }
 0x435   : > { %1994 = vmatprep.subr.bf16.mxu1 %v2274_v51 }
 0x436   : > { %2017 = vmatpush3.bf16.msra.mxu0 %v2016_v27 }
 0x437   : > { %2018 = vmatprep.subr.bf16.mxu0 %v2274_v51 }
 0x438   : > { %1996 = vmatpush3.bf16.msra.mxu1 %v1995_v62 }
 0x439   : > { %1997 = vmatprep.subr.bf16.mxu1 %v2274_v51 }
 0x43a   : > { %2020 = vmatpush3.bf16.msra.mxu0 %v2019_v35 }
 0x43b   : > { %2021 = vmatprep.subr.bf16.mxu0 %v2274_v51 }
 0x43c   : > { %1999 = vmatpush3.bf16.msra.mxu1 %v1998_v2 }
 0x43d   : > { %2000 = vmatprep.subr.bf16.mxu1 %v2274_v51 }
 0x43e   : > { %2023 = vmatpush3.bf16.msra.mxu0 %v2022_v40 }
 0x43f   : > { %2024 = vmatprep.subr.bf16.mxu0 %v2274_v51 }
 0x440   : > { %2002 = vmatpush3.bf16.msra.mxu1 %v2001_v45 }
 0x441   : > { %2003 = vmatprep.subr.bf16.mxu1 %v2274_v51 }
 0x442   : > { %2026 = vmatpush3.bf16.msra.mxu0 %v2025_v43 }
 0x443   : > { %2027 = vmatprep.subr.bf16.mxu0 %v2274_v51 }
 0x444   : > { %2005 = vmatpush3.bf16.msra.mxu1 %v2004_v5 }
 0x445   : > { %2006 = vmatprep.subr.bf16.mxu1 %v2274_v51 }
 0x446   : > { %2029 = vmatpush3.bf16.msra.mxu0 %v2028_v53 }
 0x447   : > { %2030 = vmatprep.subr.bf16.mxu0 %v2274_v51 }
 0x448   : > { %2008 = vmatpush3.bf16.msra.mxu1 %v2007_v7 }
 0x449   : > { %2009 = vmatprep.subr.bf16.mxu1 %v2274_v51 }
 0x44a   : > { %2032 = vmatpush3.bf16.msra.mxu0 %v2031_v55 }
 0x44b   : > { %2033 = vmatprep.subr.bf16.mxu0 %v2274_v51 }
 0x44c   : > { %2011 = vmatpush3.bf16.msra.mxu1 %v2010_v0 }
 0x44e   : > { %2035 = vmatpush3.bf16.msra.mxu0 %v2034_v37 }
 0x502   : > { %v984_v52 = vpop.f32.mrb[10].mxu1 }
 0x503   : > { %v1054_v4 = vpop.f32.mrb[12].mxu0  ;;  %v1710_v50 = vpop.f32.mrb[11].mxu1 }
 0x504   : > { %v1055_v11 = vadd.f32 %v1054_v4, %v984_v52  ;;  %v1745_v12 = vpop.f32.mrb[13].mxu0 }
 0x506   : > { %v1062_v13 = vadd.f32 %v1333_v10, %v1055_v11 }
 0x508   : > { %v1064_v57 = vmul.f32 0.044715, %v1062_v13  ;;  %v1063_v17 = vmul.f32 0.5, %v1062_v13 }
 0x50a   : > { %v1065_v58 = vmul.f32 %v1064_v57, %v1062_v13 }
 0x50c   : > { %v1066_v14 = vmul.f32 %v1065_v58, %v1062_v13 }
 0x50e   : > { %v1067_v15 = vadd.f32 %v1066_v14, %v1062_v13 }
 0x510   : > { %v1068_v32 = vmul.f32 0.7978846, %v1067_v15 }
 0x512   : > { %2134 = vtanh.f32 %v1068_v32 }
 0x51c   : > { %v2135_v16 = vpop.eup %2134 }
 0x51d   : > { %v1070_v18 = vadd.f32 1.0, %v2135_v16 }
 0x51f   : > { %v1071_v19 = vmul.f32 %v1070_v18, %v1063_v17 }
 0x521   : > { %1779 = vmatmul.mubr.f32.vlgmr.msra.gmra.mrb[12].mxu1 %v1071_v19 }
 0x5f4   : > { %v1142_v42 = vpop.f32.mrb[12].mxu1 }
 0x5f5   : > { %v1143_v34 = vadd.f32 %v1334_v36, %v1142_v42  ;;  %v1780_v47 = vpop.f32.mrb[13].mxu1 }
 0x5f7   : > { %1146 = vmax.xlane.f32.xlu0 %v1143_v34 }
 0x684   : > { %v1147_v61 = vpop.xlane.xlu0 %1146 }
 0x685   : > { %v1148_v33 = vsub.f32 %v1143_v34, %v1147_v61 }
 0x687   : > { %v1149_v31 = vmul.f32 1.442695, %v1148_v33 }
 0x689   : > { %2136 = vpow2.f32 %v1149_v31 }
 0x693   : > { %v2137_v62 = vpop.eup %2136 }
 0x694   : > { %1814 = vmatmul.mubr.f32.vlgmr.msra.gmra.mrb[14].mxu0 %v2137_v62 }
 0x767   : > { %v1217_v63 = vpop.f32.mrb[14].mxu0 }
 0x768   : > { %2138 = vrcp.f32 %v1217_v63  ;;  %v1815_v1 = vpop.f32.mrb[15].mxu0 }
 0x772   : > { %v2139_v2 = vpop.eup %2138 }
 0x773   : > { %v1222_v46 = vmul.f32 %v2139_v2, %v2137_v62 }
 0x775   : > { %1223 = vst [vmem:[%s176_s4] sm:$0xff] %v1222_v46 }
 0x776   : > { %2211 = shalt.err (!%p2208_p7)
}
 0x777   : > { %s2212_s18 = scalar_lea.hbm %s2658_s23, 128  ;;  %s2216_s26 = scalar_lea.hbm %s2704_s2, 256 }
 0x778   : > { %p2213_p9 = scmp.ne.s32.totalorder %s2658_s23, %s2212_s18  ;;  %p2217_p5 = scmp.lt.u32.totalorder %s2658_s23, %s2704_s2 }
 0x779   : > { %p2218_p11 = scmp.lt.u32.totalorder %s2216_s26, %s2212_s18  ;;  %p2220_p4 = scmp.lt.u32.totalorder %s2212_s18, %s2658_s23 }
 0x77a   : > { %p2214_p1 = pnand %p2213_p9, %p2387_p12 }
 0x77b   : > { %p2219_p2 = por %p2218_p11, %p2217_p5 }
 0x77c   : > { %p2215_p0 = pneg %p2214_p1 }
 0x77d   : > { %p2221_p6 = por %p2220_p4, %p2219_p2 }
 0x77f   : > { %p2222_p8 = pnand %p2221_p6, %p2215_p0 }
 0x781   : > { %2225 = shalt.err (!%p2222_p8)
}
 0x782   : > { %2042 = dma.vmem_to_hbm [thread:$0]  (%p2387_p12), %s2660_s5, 128, %s2658_s23, %s1225_s28  }
 0x783 PF: > { %s1250_s30 = sand.u32 1, %s2256_s9   ;;  %p2719_p10 = scmp.ne.s32.totalorder %s2709_s16, 0 }
 0x784   : > { %p2720_p13 = scmp.ge.s32.totalorder %s2268_s12, 2  ;;  %s1251_s3 = scalar_lea.sflag [#allocation4], %s1250_s30 }
 0x786   : > { %p2053_p3 = pnand %p2720_p13, %p2719_p10 }
 0x788   : > { %2251 = dma.done.wait (!%p2053_p3), %s1251_s3, 128  }
 0x789   : > { %2253 = vsyncadd (!%p2053_p3), %s1251_s3, 4294967168  ;;  %p16_p7 = scmp.ge.s32.totalorder %s2349_s21, 4   ;;  %s2721_s9 = smov %s2260_s10 }
 0x78a   : > { %s2722_s10 = smov %s2264_s11  ;;  %s2723_s11 = smov %s2383_s8 }
 0x78b   : > { %s2724_s12 = smov %s2349_s21  ;;  %18 = sbr.rel (!%p16_p7) target bundleno = 6 (0x6), region = 77 }
 0x792   :  { %1256 = vsyncpa [#allocation3], 1 }
 0x793   :  { %1258 = vsyncpa [#allocation3 + $0x1], 1 }
 0x794   :  { %1259 = vsyncpa [#allocation6], 1 }
 0x795   :  { %1260 = vsyncpa [#allocation4], 1 }
 0x796   :  { %1262 = vsyncpa [#allocation4 + $0x1], 1 }

</bundles_post_ra>
